<compile_context>
chip_gen: v6e
topology: v6e:2x2x1
jax: 0.10.0
libtpu: 0.0.40
codegen_flags: <defaults>
</compile_context>

<pallas_src>
import functools

import jax
import jax.numpy as jnp
from jax.experimental import pallas as pl
from jax.experimental.pallas import tpu as pltpu


# ----------------------------- helpers --------------------------------------

def _round_up(x, m):
    return ((x + m - 1) // m) * m


def _pick_tile(dim_p, candidates):
    """Largest candidate tile that exactly divides the (already padded) dim."""
    for c in candidates:
        if dim_p % c == 0:
            return c
    return dim_p


def _vmem_capacity_bytes():
    """Physical VMEM per core (128 MiB on v5e/v6e, 64 MiB/TC on v7x)."""
    try:
        info = pltpu.get_tpu_info()
        cap = getattr(info, "vmem_capacity_bytes", None)
        if cap:
            return int(cap)
    except Exception:
        pass
    return 64 * 1024 * 1024        # conservative default: v7x per-TensorCore


def _default_vmem_limit():
    # ~102 MiB on 128 MiB parts, ~51 MiB on the 64 MiB v7x TensorCore.
    return min(int(_vmem_capacity_bytes() * 0.8), 110 * 1024 * 1024)


def _select_row_tile(M, cap=512):
    """Row (M) tile for the fused path: big to amortize per-step overhead,
    but always >= 2 grid steps so the "parallel" axis can use both v7x TCs."""
    m8 = _round_up(max(M, 1), 8)
    if m8 <= 8:
        return 8
    half = _round_up((M + 1) // 2, 8)
    return min(cap, half)


def _const_spec(shape, single_buffer):
    """Full-extent block with constant index_map (resident across all M tiles).
    When possible, request a single buffer (the block never changes, so the
    default double-buffering only wastes VMEM)."""
    idx = lambda i: (0,) * len(shape)
    if single_buffer:
        try:
            return pl.BlockSpec(shape, idx, pipeline_mode=pl.Buffered(1))
        except Exception:
            pass
    return pl.BlockSpec(shape, idx)


# ----------------------- fused whole-MLP kernel ------------------------------

_K_CHUNK = 512   # static K-chunk for wide layers (multiple of 128)


def _fused_mlp_kernel(*refs, num_layers):
    """refs = (x_ref, w0_ref, b0_ref, ..., w{L-1}_ref, b{L-1}_ref, o_ref).

    One (tm, D0_pad) row tile flows through all layers while the weights sit
    resident in VMEM; only the final activation is written out.  The lhs is
    cast to the weight dtype (the MXU compute dtype), accumulation is f32.
    """
    x_ref = refs[0]
    o_ref = refs[-1]
    tm = x_ref.shape[0]

    def chunked_dot(get_lhs, w_ref):
        K, dout = w_ref.shape
        cd = w_ref.dtype
        if K > _K_CHUNK and K % _K_CHUNK == 0:
            # Static-offset chunk loop: only (tm x 512) / (512 x dout) operand
            # slices are live per MXU issue, bounding vreg/VMEM spill pressure
            # for very wide hidden dims.  Offsets are Python ints -> aligned,
            # static lane slices.
            acc = jnp.zeros((tm, dout), jnp.float32)
            for kk in range(0, K, _K_CHUNK):
                lh = get_lhs(kk, _K_CHUNK)
                if lh.dtype != cd:
                    lh = lh.astype(cd)
                acc = acc + jnp.dot(lh, w_ref[kk:kk + _K_CHUNK, :],
                                    preferred_element_type=jnp.float32)
            return acc
        lh = get_lhs(0, K)
        if lh.dtype != cd:
            lh = lh.astype(cd)
        return jnp.dot(lh, w_ref[...], preferred_element_type=jnp.float32)

    h = None
    for i in range(num_layers):
        w_ref = refs[1 + 2 * i]
        b_ref = refs[2 + 2 * i]
        if i == 0:
            get_lhs = lambda kk, sz: x_ref[:, kk:kk + sz]       # slice the ref
        else:
            hv = h
            get_lhs = lambda kk, sz, hv=hv: hv[:, kk:kk + sz]   # slice the value
        y = chunked_dot(get_lhs, w_ref) + b_ref[...].astype(jnp.float32)  # VPU epilogue
        if i < num_layers - 1:
            y = jnp.maximum(y, 0.0)
        h = y
    o_ref[...] = h.astype(o_ref.dtype)


def mlp_forward_fused(x, prepared, out_dim, *, tm=None, vmem_limit_bytes=None):
    """x: (..., input_dim). prepared: list of (W_pad (Din_p, Dout_p), b_pad (1, Dout_p))."""
    lead_shape = x.shape[:-1]
    din = x.shape[-1]
    xf = x.reshape(-1, din)
    M = xf.shape[0]

    din_p = prepared[0][0].shape[0]
    dout_p = prepared[-1][0].shape[1]
    num_layers = len(prepared)

    if tm is None:
        tm = _select_row_tile(M)
    m_p = _round_up(M, tm)
    x_p = jnp.pad(xf, ((0, m_p - M), (0, din_p - din)))

    if vmem_limit_bytes is None:
        vmem_limit_bytes = _default_vmem_limit()

    flops = 2 * m_p * sum(w.shape[0] * w.shape[1] for (w, _) in prepared)
    bytes_accessed = (
        x_p.size * x_p.dtype.itemsize
        + sum(w.size * w.dtype.itemsize + b.size * b.dtype.itemsize
              for (w, b) in prepared)
        + m_p * dout_p * x.dtype.itemsize
    )

    kernel = functools.partial(_fused_mlp_kernel, num_layers=num_layers)
    flat_wb = [a for wb in prepared for a in wb]

    def build_and_call(single_buffer_weights):
        in_specs = [pl.BlockSpec((tm, din_p), lambda i: (i, 0))]
        for (w_p, b_p) in prepared:
            in_specs.append(_const_spec(w_p.shape, single_buffer_weights))
            in_specs.append(_const_spec(b_p.shape, single_buffer_weights))
        return pl.pallas_call(
            kernel,
            out_shape=jax.ShapeDtypeStruct((m_p, dout_p), x.dtype),
            grid_spec=pltpu.PrefetchScalarGridSpec(
                num_scalar_prefetch=0,
                grid=(m_p // tm,),
                in_specs=in_specs,
                out_specs=pl.BlockSpec((tm, dout_p), lambda i: (i, 0)),
            ),
            compiler_params=pltpu.CompilerParams(
                dimension_semantics=("parallel",),      # shard M tiles across TCs
                vmem_limit_bytes=vmem_limit_bytes,      # generation-aware
            ),
            cost_estimate=pl.CostEstimate(flops=flops, transcendentals=0,
                                          bytes_accessed=bytes_accessed),
        )(x_p, *flat_wb)

    try:
        out_p = build_and_call(True)      # single-buffered constant weight blocks
    except Exception:
        out_p = build_and_call(False)     # fall back to default double-buffering

    return out_p[:M, :out_dim].reshape(*lead_shape, out_dim)


# ------------------ tiled single-layer fallback (large layers) ---------------

def _linear_tiled_kernel(x_ref, w_ref, b_ref, o_ref, acc_ref, *, apply_relu):
    k = pl.program_id(2)

    @pl.when(k == 0)
    def _():
        acc_ref[...] = jnp.zeros_like(acc_ref)

    xv = x_ref[...]
    if xv.dtype != w_ref.dtype:
        xv = xv.astype(w_ref.dtype)           # feed the MXU in the weight dtype
    acc_ref[...] += jnp.dot(xv, w_ref[...], preferred_element_type=jnp.float32)

    @pl.when(k == pl.num_programs(2) - 1)
    def _():
        y = acc_ref[...] + b_ref[...].astype(jnp.float32)
        if apply_relu:
            y = jnp.maximum(y, 0.0)
        o_ref[...] = y.astype(o_ref.dtype)


def linear_tiled(x_p, w_p, b_p, *, apply_relu, tm, out_dtype, vmem_limit_bytes):
    """x_p: (M_p, Din_p) padded; w_p: (Din_p, Dout_p); b_p: (1, Dout_p)."""
    M_p, Din_p = x_p.shape
    Dout_p = w_p.shape[1]
    # 512-class tiles: bigger tm -> fewer full-weight re-reads, bigger tn ->
    # fewer activation re-reads; working set stays well under VMEM on all gens.
    tk = _pick_tile(Din_p, (1024, 512, 256, 128))
    tn = _pick_tile(Dout_p, (512, 256, 128))
    grid = (M_p // tm, Dout_p // tn, Din_p // tk)

    kernel = functools.partial(_linear_tiled_kernel, apply_relu=apply_relu)
    flops = 2 * M_p * Din_p * Dout_p
    bytes_accessed = (x_p.size * x_p.dtype.itemsize
                      + w_p.size * w_p.dtype.itemsize
                      + b_p.size * b_p.dtype.itemsize
                      + M_p * Dout_p * jnp.dtype(out_dtype).itemsize)

    return pl.pallas_call(
        kernel,
        out_shape=jax.ShapeDtypeStruct((M_p, Dout_p), out_dtype),
        grid_spec=pltpu.PrefetchScalarGridSpec(
            num_scalar_prefetch=0,
            grid=grid,
            in_specs=[
                pl.BlockSpec((tm, tk), lambda i, j, k: (i, k)),
                pl.BlockSpec((tk, tn), lambda i, j, k: (k, j)),
                pl.BlockSpec((1, tn), lambda i, j, k: (0, j)),
            ],
            out_specs=pl.BlockSpec((tm, tn), lambda i, j, k: (i, j)),
            scratch_shapes=[pltpu.VMEM((tm, tn), jnp.float32)],
        ),
        compiler_params=pltpu.CompilerParams(
            dimension_semantics=("parallel", "parallel", "arbitrary"),
            vmem_limit_bytes=vmem_limit_bytes,
        ),
        cost_estimate=pl.CostEstimate(flops=flops, transcendentals=0,
                                      bytes_accessed=bytes_accessed),
    )(x_p, w_p, b_p)


def mlp_forward_tiled(x, prepared, out_dim, *, vmem_limit_bytes=None):
    lead_shape = x.shape[:-1]
    din = x.shape[-1]
    xf = x.reshape(-1, din)
    M = xf.shape[0]
    din_p = prepared[0][0].shape[0]

    if vmem_limit_bytes is None:
        vmem_limit_bytes = _default_vmem_limit()

    tm = min(512, _round_up(M, 8))
    m_p = _round_up(M, tm)
    h = jnp.pad(xf, ((0, m_p - M), (0, din_p - din)))

    num_layers = len(prepared)
    for i, (w_p, b_p) in enumerate(prepared):
        last = (i == num_layers - 1)
        # Intermediate activations in the compute (weight) dtype: bf16 halves
        # the inter-layer HBM round-trip; final output back in x.dtype.
        layer_out_dtype = x.dtype if last else w_p.dtype
        h = linear_tiled(h, w_p, b_p, apply_relu=not last, tm=tm,
                         out_dtype=layer_out_dtype,
                         vmem_limit_bytes=vmem_limit_bytes)
    return h[:M, :out_dim].reshape(*lead_shape, out_dim)


# ----------------------------- params / dispatch -----------------------------

def init_mlp_params(key, input_dim, hidden_dim, output_dim, num_layers,
                    dtype=jnp.float32):
    """Mirror nn.Linear: weight (out, in), bias (out,), uniform(-1/sqrt(in), 1/sqrt(in))."""
    h = [hidden_dim] * (num_layers - 1)
    dims = list(zip([input_dim] + h, h + [output_dim]))
    params = []
    for (n_in, n_out) in dims:
        key, kw, kb = jax.random.split(key, 3)
        bound = 1.0 / jnp.sqrt(jnp.array(n_in, dtype=jnp.float32))
        w = jax.random.uniform(kw, (n_out, n_in), dtype=dtype,
                               minval=-bound, maxval=bound)
        b = jax.random.uniform(kb, (n_out,), dtype=dtype,
                               minval=-bound, maxval=bound)
        params.append((w, b))
    return params


def prepare_mlp_params(params, lane=128, compute_dtype=None):
    """One-time conversion: transpose to (Din, Dout), zero-pad feature dims to
    multiples of 128 (lane-dense MXU feeds / unmasked stores) and optionally
    store in the MXU compute dtype (e.g. bf16) -- no per-forward transposes or
    per-tile weight casts.  Zero padding keeps the math exact through ReLU."""
    prepared = []
    for (w, b) in params:
        n_out, n_in = w.shape
        din_p = _round_up(n_in, lane)
        dout_p = _round_up(n_out, lane)
        w_t = jnp.transpose(w)                                   # once, not per-forward
        w_p = jnp.pad(w_t, ((0, din_p - n_in), (0, dout_p - n_out)))
        b_p = jnp.pad(b, (0, dout_p - n_out)).reshape(1, dout_p)
        if compute_dtype is not None:
            w_p = w_p.astype(compute_dtype)
            b_p = b_p.astype(compute_dtype)
        prepared.append((w_p, b_p))
    out_dim = params[-1][0].shape[0]
    return prepared, out_dim


def _fused_vmem_bytes(tm, prepared, x_dtype, out_dtype, weight_buffers=1):
    """Everything the fused kernel keeps in VMEM: resident weights/biases,
    double-buffered input/output tiles, and live f32 intermediates."""
    wb = sum(w.size * w.dtype.itemsize + b.size * b.dtype.itemsize
             for (w, b) in prepared)
    din_p = prepared[0][0].shape[0]
    dout_p = prepared[-1][0].shape[1]
    widest = max([din_p] + [w.shape[1] for (w, _) in prepared])
    est = weight_buffers * wb
    est += 2 * tm * din_p * jnp.dtype(x_dtype).itemsize     # input tile (2 bufs)
    est += 2 * tm * dout_p * jnp.dtype(out_dtype).itemsize  # output tile (2 bufs)
    est += 2 * tm * widest * 4                              # live f32 h / y
    return est


def mlp_forward(x, prepared, out_dim):
    """Fused single-kernel path when the whole working set fits in VMEM,
    otherwise the (M, N, K)-tiled per-layer path."""
    M = 1
    for d in x.shape[:-1]:
        M *= d
    tm = _select_row_tile(M)
    vmem_limit = _default_vmem_limit()
    budget = int(vmem_limit * 0.85)
    est = _fused_vmem_bytes(tm, prepared, x.dtype, x.dtype, weight_buffers=1)
    if est <= budget:
        try:
            return mlp_forward_fused(x, prepared, out_dim, tm=tm,
                                     vmem_limit_bytes=vmem_limit)
        except Exception:
            pass   # robustness: e.g. unexpected VMEM overflow -> tiled fallback
    return mlp_forward_tiled(x, prepared, out_dim, vmem_limit_bytes=vmem_limit)


def mlp_reference(x, params):
    """Pure-JAX reference (PyTorch convention: y = x @ W.T + b)."""
    num_layers = len(params)
    for i, (w, b) in enumerate(params):
        x = x @ w.T + b
        if i < num_layers - 1:
            x = jax.nn.relu(x)
    return x


# --------------------------------- test --------------------------------------

if __name__ == "__main__":
    key = jax.random.PRNGKey(0)

    # ---- small config (typical LVTR MLP head) --------------------------------
    key, kx, kp = jax.random.split(key, 3)
    batch, seq = 2, 8
    input_dim, hidden_dim, output_dim, num_layers = 32, 64, 16, 3

    x = jax.random.normal(kx, (batch, seq, input_dim), dtype=jnp.float32)
    params = init_mlp_params(kp, input_dim, hidden_dim, output_dim, num_layers)
    ref = mlp_reference(x, params)

    # f32 weights: dispatcher -> fused path (tight tolerance).
    prep_f32, out_dim = prepare_mlp_params(params)
    out = jax.block_until_ready(mlp_forward(x, prep_f32, out_dim))
    assert out.shape == (batch, seq, output_dim), out.shape
    assert jnp.allclose(out, ref, atol=1e-5, rtol=1e-5), "fused f32 mismatch vs reference"

    # Tiled fallback path (used when the working set exceeds the VMEM budget).
    out_t = jax.block_until_ready(mlp_forward_tiled(x, prep_f32, out_dim))
    assert jnp.allclose(out_t, ref, atol=1e-5, rtol=1e-5), "tiled mismatch vs reference"

    # bf16 weights (MXU compute dtype); accumulation stays f32 -> loose tolerance.
    prep_bf16, _ = prepare_mlp_params(params, compute_dtype=jnp.bfloat16)
    out_bf = jax.block_until_ready(mlp_forward_fused(x, prep_bf16, out_dim))
    assert out_bf.shape == (batch, seq, output_dim), out_bf.shape
    assert jnp.allclose(out_bf, ref, atol=3e-2, rtol=3e-2), "fused bf16 mismatch vs reference"

    # ---- medium config: wide layers exercise the K-chunked resident dots -----
    key, kx2, kp2 = jax.random.split(key, 3)
    b2, s2 = 4, 64
    in2, hid2, out2, nl2 = 1024, 1024, 256, 2
    x2 = jax.random.normal(kx2, (b2, s2, in2), dtype=jnp.float32)
    params2 = init_mlp_params(kp2, in2, hid2, out2, nl2)
    prep2, od2 = prepare_mlp_params(params2)
    ref2 = mlp_reference(x2, params2)
    out2_ = jax.block_until_ready(mlp_forward_fused(x2, prep2, od2))
    assert out2_.shape == (b2, s2, out2), out2_.shape
    assert jnp.allclose(out2_, ref2, atol=5e-3, rtol=5e-3), "fused chunked mismatch vs reference"

    print("KERNEL_OK")
</pallas_src>

<mosaic_0001>
module attributes {stable_mosaic.version = 11 : i64} {
  func.func @_fused_mlp_kernel(%arg0: i32, %arg1: memref<8x128xf32, #tpu.memory_space<vmem>>, %arg2: memref<128x128xf32, #tpu.memory_space<vmem>>, %arg3: memref<1x128xf32, #tpu.memory_space<vmem>>, %arg4: memref<128x128xf32, #tpu.memory_space<vmem>>, %arg5: memref<1x128xf32, #tpu.memory_space<vmem>>, %arg6: memref<128x128xf32, #tpu.memory_space<vmem>>, %arg7: memref<1x128xf32, #tpu.memory_space<vmem>>, %arg8: memref<8x128xf32, #tpu.memory_space<vmem>>) attributes {dimension_semantics = [#tpu.dimension_semantics<parallel>], iteration_bounds = array<i64: 2>, scalar_prefetch = 0 : i64, scratch_operands = 0 : i64, tpu.core_type = #tpu.core_type<tc>, window_params = [{transform_indices = @transform_0, window_bounds = array<i64: 8, 128>}, {pipeline_mode = #tpu.pipeline_mode<synchronous>, transform_indices = @transform_1, window_bounds = array<i64: 128, 128>}, {pipeline_mode = #tpu.pipeline_mode<synchronous>, transform_indices = @transform_2, window_bounds = array<i64: 1, 128>}, {pipeline_mode = #tpu.pipeline_mode<synchronous>, transform_indices = @transform_3, window_bounds = array<i64: 128, 128>}, {pipeline_mode = #tpu.pipeline_mode<synchronous>, transform_indices = @transform_4, window_bounds = array<i64: 1, 128>}, {pipeline_mode = #tpu.pipeline_mode<synchronous>, transform_indices = @transform_5, window_bounds = array<i64: 128, 128>}, {pipeline_mode = #tpu.pipeline_mode<synchronous>, transform_indices = @transform_6, window_bounds = array<i64: 1, 128>}, {transform_indices = @transform_7, window_bounds = array<i64: 8, 128>}]} {
    %c0 = arith.constant 0 : index
    %c0_0 = arith.constant 0 : index
    %0 = vector.load %arg1[%c0, %c0_0] : memref<8x128xf32, #tpu.memory_space<vmem>>, vector<8x128xf32>
    %c0_1 = arith.constant 0 : index
    %c0_2 = arith.constant 0 : index
    %1 = vector.load %arg2[%c0_1, %c0_2] : memref<128x128xf32, #tpu.memory_space<vmem>>, vector<128x128xf32>
    %cst = arith.constant dense<0.000000e+00> : vector<8x128xf32>
    %2 = tpu.matmul %0, %1, %cst {dimension_numbers = #tpu.dot_dimension_numbers<[1], [0], [0], [1], [0, 0, 1, 1], [], []>} : vector<8x128xf32>, vector<128x128xf32>, vector<8x128xf32> -> vector<8x128xf32>
    %c0_3 = arith.constant 0 : index
    %c0_4 = arith.constant 0 : index
    %3 = vector.load %arg3[%c0_3, %c0_4] : memref<1x128xf32, #tpu.memory_space<vmem>>, vector<1x128xf32>
    %4 = vector.broadcast %3 : vector<1x128xf32> to vector<8x128xf32>
    %5 = arith.addf %2, %4 : vector<8x128xf32>
    %cst_5 = arith.constant 0.000000e+00 : f32
    %6 = vector.broadcast %cst_5 : f32 to vector<8x128xf32>
    %7 = arith.maximumf %5, %6 : vector<8x128xf32>
    %c0_6 = arith.constant 0 : index
    %c0_7 = arith.constant 0 : index
    %8 = vector.load %arg4[%c0_6, %c0_7] : memref<128x128xf32, #tpu.memory_space<vmem>>, vector<128x128xf32>
    %cst_8 = arith.constant dense<0.000000e+00> : vector<8x128xf32>
    %9 = tpu.matmul %7, %8, %cst_8 {dimension_numbers = #tpu.dot_dimension_numbers<[1], [0], [0], [1], [0, 0, 1, 1], [], []>} : vector<8x128xf32>, vector<128x128xf32>, vector<8x128xf32> -> vector<8x128xf32>
    %c0_9 = arith.constant 0 : index
    %c0_10 = arith.constant 0 : index
    %10 = vector.load %arg5[%c0_9, %c0_10] : memref<1x128xf32, #tpu.memory_space<vmem>>, vector<1x128xf32>
    %11 = vector.broadcast %10 : vector<1x128xf32> to vector<8x128xf32>
    %12 = arith.addf %9, %11 : vector<8x128xf32>
    %cst_11 = arith.constant 0.000000e+00 : f32
    %13 = vector.broadcast %cst_11 : f32 to vector<8x128xf32>
    %14 = arith.maximumf %12, %13 : vector<8x128xf32>
    %c0_12 = arith.constant 0 : index
    %c0_13 = arith.constant 0 : index
    %15 = vector.load %arg6[%c0_12, %c0_13] : memref<128x128xf32, #tpu.memory_space<vmem>>, vector<128x128xf32>
    %cst_14 = arith.constant dense<0.000000e+00> : vector<8x128xf32>
    %16 = tpu.matmul %14, %15, %cst_14 {dimension_numbers = #tpu.dot_dimension_numbers<[1], [0], [0], [1], [0, 0, 1, 1], [], []>} : vector<8x128xf32>, vector<128x128xf32>, vector<8x128xf32> -> vector<8x128xf32>
    %c0_15 = arith.constant 0 : index
    %c0_16 = arith.constant 0 : index
    %17 = vector.load %arg7[%c0_15, %c0_16] : memref<1x128xf32, #tpu.memory_space<vmem>>, vector<1x128xf32>
    %18 = vector.broadcast %17 : vector<1x128xf32> to vector<8x128xf32>
    %19 = arith.addf %16, %18 : vector<8x128xf32>
    %c0_17 = arith.constant 0 : index
    %c0_18 = arith.constant 0 : index
    %20 = vector.load %arg8[%c0_17, %c0_18] : memref<8x128xf32, #tpu.memory_space<vmem>>, vector<8x128xf32>
    tpu.vector_store %arg8[%c0_17, %c0_18], %19 {strides = array<i32>} : memref<8x128xf32, #tpu.memory_space<vmem>>, vector<8x128xf32>,
    return
  }
  func.func @transform_0(%arg0: i32) -> (i32, i32) {
    %c0_i32 = arith.constant 0 : i32
    %c0_i32_0 = arith.constant 0 : i32
    return %arg0, %c0_i32 : i32, i32
  }
  func.func @transform_1(%arg0: i32) -> (i32, i32) {
    %c0_i32 = arith.constant 0 : i32
    %c0_i32_0 = arith.constant 0 : i32
    %c0_i32_1 = arith.constant 0 : i32
    return %c0_i32, %c0_i32_0 : i32, i32
  }
  func.func @transform_2(%arg0: i32) -> (i32, i32) {
    %c0_i32 = arith.constant 0 : i32
    %c0_i32_0 = arith.constant 0 : i32
    %c0_i32_1 = arith.constant 0 : i32
    return %c0_i32, %c0_i32_0 : i32, i32
  }
  func.func @transform_3(%arg0: i32) -> (i32, i32) {
    %c0_i32 = arith.constant 0 : i32
    %c0_i32_0 = arith.constant 0 : i32
    %c0_i32_1 = arith.constant 0 : i32
    return %c0_i32, %c0_i32_0 : i32, i32
  }
  func.func @transform_4(%arg0: i32) -> (i32, i32) {
    %c0_i32 = arith.constant 0 : i32
    %c0_i32_0 = arith.constant 0 : i32
    %c0_i32_1 = arith.constant 0 : i32
    return %c0_i32, %c0_i32_0 : i32, i32
  }
  func.func @transform_5(%arg0: i32) -> (i32, i32) {
    %c0_i32 = arith.constant 0 : i32
    %c0_i32_0 = arith.constant 0 : i32
    %c0_i32_1 = arith.constant 0 : i32
    return %c0_i32, %c0_i32_0 : i32, i32
  }
  func.func @transform_6(%arg0: i32) -> (i32, i32) {
    %c0_i32 = arith.constant 0 : i32
    %c0_i32_0 = arith.constant 0 : i32
    %c0_i32_1 = arith.constant 0 : i32
    return %c0_i32, %c0_i32_0 : i32, i32
  }
  func.func @transform_7(%arg0: i32) -> (i32, i32) {
    %c0_i32 = arith.constant 0 : i32
    %c0_i32_0 = arith.constant 0 : i32
    return %arg0, %c0_i32 : i32, i32
  }
}

module attributes {stable_mosaic.version = 11 : i64} {
  func.func @_fused_mlp_kernel(%arg0: i32, %arg1: memref<8x128xf32, #tpu.memory_space<vmem>>, %arg2: memref<128x128xf32, #tpu.memory_space<vmem>>, %arg3: memref<1x128xf32, #tpu.memory_space<vmem>>, %arg4: memref<128x128xf32, #tpu.memory_space<vmem>>, %arg5: memref<1x128xf32, #tpu.memory_space<vmem>>, %arg6: memref<128x128xf32, #tpu.memory_space<vmem>>, %arg7: memref<1x128xf32, #tpu.memory_space<vmem>>, %arg8: memref<8x128xf32, #tpu.memory_space<vmem>>) attributes {dimension_semantics = [#tpu.dimension_semantics<parallel>], iteration_bounds = array<i64: 2>, scalar_prefetch = 0 : i64, scratch_operands = 0 : i64, tpu.core_type = #tpu.core_type<tc>, window_params = [{transform_indices = @transform_0, window_bounds = array<i64: 8, 128>}, {pipeline_mode = #tpu.pipeline_mode<synchronous>, transform_indices = @transform_1, window_bounds = array<i64: 128, 128>}, {pipeline_mode = #tpu.pipeline_mode<synchronous>, transform_indices = @transform_2, window_bounds = array<i64: 1, 128>}, {pipeline_mode = #tpu.pipeline_mode<synchronous>, transform_indices = @transform_3, window_bounds = array<i64: 128, 128>}, {pipeline_mode = #tpu.pipeline_mode<synchronous>, transform_indices = @transform_4, window_bounds = array<i64: 1, 128>}, {pipeline_mode = #tpu.pipeline_mode<synchronous>, transform_indices = @transform_5, window_bounds = array<i64: 128, 128>}, {pipeline_mode = #tpu.pipeline_mode<synchronous>, transform_indices = @transform_6, window_bounds = array<i64: 1, 128>}, {transform_indices = @transform_7, window_bounds = array<i64: 8, 128>}]} {
    %c0 = arith.constant 0 : index
    %c0_0 = arith.constant 0 : index
    %0 = vector.load %arg1[%c0, %c0_0] : memref<8x128xf32, #tpu.memory_space<vmem>>, vector<8x128xf32>
    %c0_1 = arith.constant 0 : index
    %c0_2 = arith.constant 0 : index
    %1 = vector.load %arg2[%c0_1, %c0_2] : memref<128x128xf32, #tpu.memory_space<vmem>>, vector<128x128xf32>
    %cst = arith.constant dense<0.000000e+00> : vector<8x128xf32>
    %2 = tpu.matmul %0, %1, %cst {dimension_numbers = #tpu.dot_dimension_numbers<[1], [0], [0], [1], [0, 0, 1, 1], [], []>} : vector<8x128xf32>, vector<128x128xf32>, vector<8x128xf32> -> vector<8x128xf32>
    %c0_3 = arith.constant 0 : index
    %c0_4 = arith.constant 0 : index
    %3 = vector.load %arg3[%c0_3, %c0_4] : memref<1x128xf32, #tpu.memory_space<vmem>>, vector<1x128xf32>
    %4 = vector.broadcast %3 : vector<1x128xf32> to vector<8x128xf32>
    %5 = arith.addf %2, %4 : vector<8x128xf32>
    %cst_5 = arith.constant 0.000000e+00 : f32
    %6 = vector.broadcast %cst_5 : f32 to vector<8x128xf32>
    %7 = arith.maximumf %5, %6 : vector<8x128xf32>
    %c0_6 = arith.constant 0 : index
    %c0_7 = arith.constant 0 : index
    %8 = vector.load %arg4[%c0_6, %c0_7] : memref<128x128xf32, #tpu.memory_space<vmem>>, vector<128x128xf32>
    %cst_8 = arith.constant dense<0.000000e+00> : vector<8x128xf32>
    %9 = tpu.matmul %7, %8, %cst_8 {dimension_numbers = #tpu.dot_dimension_numbers<[1], [0], [0], [1], [0, 0, 1, 1], [], []>} : vector<8x128xf32>, vector<128x128xf32>, vector<8x128xf32> -> vector<8x128xf32>
    %c0_9 = arith.constant 0 : index
    %c0_10 = arith.constant 0 : index
    %10 = vector.load %arg5[%c0_9, %c0_10] : memref<1x128xf32, #tpu.memory_space<vmem>>, vector<1x128xf32>
    %11 = vector.broadcast %10 : vector<1x128xf32> to vector<8x128xf32>
    %12 = arith.addf %9, %11 : vector<8x128xf32>
    %cst_11 = arith.constant 0.000000e+00 : f32
    %13 = vector.broadcast %cst_11 : f32 to vector<8x128xf32>
    %14 = arith.maximumf %12, %13 : vector<8x128xf32>
    %c0_12 = arith.constant 0 : index
    %c0_13 = arith.constant 0 : index
    %15 = vector.load %arg6[%c0_12, %c0_13] : memref<128x128xf32, #tpu.memory_space<vmem>>, vector<128x128xf32>
    %cst_14 = arith.constant dense<0.000000e+00> : vector<8x128xf32>
    %16 = tpu.matmul %14, %15, %cst_14 {dimension_numbers = #tpu.dot_dimension_numbers<[1], [0], [0], [1], [0, 0, 1, 1], [], []>} : vector<8x128xf32>, vector<128x128xf32>, vector<8x128xf32> -> vector<8x128xf32>
    %c0_15 = arith.constant 0 : index
    %c0_16 = arith.constant 0 : index
    %17 = vector.load %arg7[%c0_15, %c0_16] : memref<1x128xf32, #tpu.memory_space<vmem>>, vector<1x128xf32>
    %18 = vector.broadcast %17 : vector<1x128xf32> to vector<8x128xf32>
    %19 = arith.addf %16, %18 : vector<8x128xf32>
    %c0_17 = arith.constant 0 : index
    %c0_18 = arith.constant 0 : index
    %20 = vector.load %arg8[%c0_17, %c0_18] : memref<8x128xf32, #tpu.memory_space<vmem>>, vector<8x128xf32>
    tpu.vector_store %arg8[%c0_17, %c0_18], %19 {strides = array<i32>} : memref<8x128xf32, #tpu.memory_space<vmem>>, vector<8x128xf32>,
    return
  }
  func.func @transform_0(%arg0: i32) -> (i32, i32) {
    %c0_i32 = arith.constant 0 : i32
    %c0_i32_0 = arith.constant 0 : i32
    return %arg0, %c0_i32 : i32, i32
  }
  func.func @transform_1(%arg0: i32) -> (i32, i32) {
    %c0_i32 = arith.constant 0 : i32
    %c0_i32_0 = arith.constant 0 : i32
    %c0_i32_1 = arith.constant 0 : i32
    return %c0_i32, %c0_i32_0 : i32, i32
  }
  func.func @transform_2(%arg0: i32) -> (i32, i32) {
    %c0_i32 = arith.constant 0 : i32
    %c0_i32_0 = arith.constant 0 : i32
    %c0_i32_1 = arith.constant 0 : i32
    return %c0_i32, %c0_i32_0 : i32, i32
  }
  func.func @transform_3(%arg0: i32) -> (i32, i32) {
    %c0_i32 = arith.constant 0 : i32
    %c0_i32_0 = arith.constant 0 : i32
    %c0_i32_1 = arith.constant 0 : i32
    return %c0_i32, %c0_i32_0 : i32, i32
  }
  func.func @transform_4(%arg0: i32) -> (i32, i32) {
    %c0_i32 = arith.constant 0 : i32
    %c0_i32_0 = arith.constant 0 : i32
    %c0_i32_1 = arith.constant 0 : i32
    return %c0_i32, %c0_i32_0 : i32, i32
  }
  func.func @transform_5(%arg0: i32) -> (i32, i32) {
    %c0_i32 = arith.constant 0 : i32
    %c0_i32_0 = arith.constant 0 : i32
    %c0_i32_1 = arith.constant 0 : i32
    return %c0_i32, %c0_i32_0 : i32, i32
  }
  func.func @transform_6(%arg0: i32) -> (i32, i32) {
    %c0_i32 = arith.constant 0 : i32
    %c0_i32_0 = arith.constant 0 : i32
    %c0_i32_1 = arith.constant 0 : i32
    return %c0_i32, %c0_i32_0 : i32, i32
  }
  func.func @transform_7(%arg0: i32) -> (i32, i32) {
    %c0_i32 = arith.constant 0 : i32
    %c0_i32_0 = arith.constant 0 : i32
    return %arg0, %c0_i32 : i32, i32
  }
}

module attributes {stable_mosaic.version = 11 : i64} {
  func.func @_linear_tiled_kernel(%arg0: i32, %arg1: i32, %arg2: i32, %arg3: memref<16x128xf32, #tpu.memory_space<vmem>>, %arg4: memref<128x128xf32, #tpu.memory_space<vmem>>, %arg5: memref<1x128xf32, #tpu.memory_space<vmem>>, %arg6: memref<16x128xf32, #tpu.memory_space<vmem>>, %arg7: memref<16x128xf32, #tpu.memory_space<vmem>>) attributes {dimension_semantics = [#tpu.dimension_semantics<parallel>, #tpu.dimension_semantics<parallel>, #tpu.dimension_semantics<arbitrary>], iteration_bounds = array<i64: 1, 1, 1>, scalar_prefetch = 0 : i64, scratch_operands = 1 : i64, tpu.core_type = #tpu.core_type<tc>, window_params = [{transform_indices = @transform_0, window_bounds = array<i64: 16, 128>}, {transform_indices = @transform_1, window_bounds = array<i64: 128, 128>}, {transform_indices = @transform_2, window_bounds = array<i64: 1, 128>}, {transform_indices = @transform_3, window_bounds = array<i64: 16, 128>}]} {
    %c0_i32 = arith.constant 0 : i32
    %0 = arith.cmpi eq, %arg2, %c0_i32 : i32
    %1 = arith.extui %0 : i1 to i32
    %c0_i32_0 = arith.constant 0 : i32
    %2 = arith.cmpi ne, %1, %c0_i32_0 : i32
    scf.if %2 {
      %cst_10 = arith.constant 0.000000e+00 : f32
      %12 = vector.broadcast %cst_10 : f32 to vector<16x128xf32>
      %c0_11 = arith.constant 0 : index
      %c0_12 = arith.constant 0 : index
      %13 = vector.load %arg7[%c0_11, %c0_12] : memref<16x128xf32, #tpu.memory_space<vmem>>, vector<16x128xf32>
      tpu.vector_store %arg7[%c0_11, %c0_12], %12 {strides = array<i32>} : memref<16x128xf32, #tpu.memory_space<vmem>>, vector<16x128xf32>,
    } else {
    }
    %c0 = arith.constant 0 : index
    %c0_1 = arith.constant 0 : index
    %3 = vector.load %arg3[%c0, %c0_1] : memref<16x128xf32, #tpu.memory_space<vmem>>, vector<16x128xf32>
    %c0_2 = arith.constant 0 : index
    %c0_3 = arith.constant 0 : index
    %4 = vector.load %arg7[%c0_2, %c0_3] : memref<16x128xf32, #tpu.memory_space<vmem>>, vector<16x128xf32>
    %c0_4 = arith.constant 0 : index
    %c0_5 = arith.constant 0 : index
    %5 = vector.load %arg4[%c0_4, %c0_5] : memref<128x128xf32, #tpu.memory_space<vmem>>, vector<128x128xf32>
    %cst = arith.constant dense<0.000000e+00> : vector<16x128xf32>
    %6 = tpu.matmul %3, %5, %cst {dimension_numbers = #tpu.dot_dimension_numbers<[1], [0], [0], [1], [0, 0, 1, 1], [], []>} : vector<16x128xf32>, vector<128x128xf32>, vector<16x128xf32> -> vector<16x128xf32>
    %7 = arith.addf %4, %6 : vector<16x128xf32>
    %c0_6 = arith.constant 0 : index
    %c0_7 = arith.constant 0 : index
    %8 = vector.load %arg7[%c0_6, %c0_7] : memref<16x128xf32, #tpu.memory_space<vmem>>, vector<16x128xf32>
    tpu.vector_store %arg7[%c0_6, %c0_7], %7 {strides = array<i32>} : memref<16x128xf32, #tpu.memory_space<vmem>>, vector<16x128xf32>,
    %c0_i32_8 = arith.constant 0 : i32
    %9 = arith.cmpi eq, %arg2, %c0_i32_8 : i32
    %10 = arith.extui %9 : i1 to i32
    %c0_i32_9 = arith.constant 0 : i32
    %11 = arith.cmpi ne, %10, %c0_i32_9 : i32
    scf.if %11 {
      %c0_10 = arith.constant 0 : index
      %c0_11 = arith.constant 0 : index
      %12 = vector.load %arg7[%c0_10, %c0_11] : memref<16x128xf32, #tpu.memory_space<vmem>>, vector<16x128xf32>
      %c0_12 = arith.constant 0 : index
      %c0_13 = arith.constant 0 : index
      %13 = vector.load %arg5[%c0_12, %c0_13] : memref<1x128xf32, #tpu.memory_space<vmem>>, vector<1x128xf32>
      %14 = vector.broadcast %13 : vector<1x128xf32> to vector<16x128xf32>
      %15 = arith.addf %12, %14 : vector<16x128xf32>
      %cst_14 = arith.constant 0.000000e+00 : f32
      %16 = vector.broadcast %cst_14 : f32 to vector<16x128xf32>
      %17 = arith.maximumf %15, %16 : vector<16x128xf32>
      %c0_15 = arith.constant 0 : index
      %c0_16 = arith.constant 0 : index
      %18 = vector.load %arg6[%c0_15, %c0_16] : memref<16x128xf32, #tpu.memory_space<vmem>>, vector<16x128xf32>
      tpu.vector_store %arg6[%c0_15, %c0_16], %17 {strides = array<i32>} : memref<16x128xf32, #tpu.memory_space<vmem>>, vector<16x128xf32>,
    } else {
    }
    return
  }
  func.func @transform_0(%arg0: i32, %arg1: i32, %arg2: i32) -> (i32, i32) {
    %c0_i32 = arith.constant 0 : i32
    return %arg0, %arg2 : i32, i32
  }
  func.func @transform_1(%arg0: i32, %arg1: i32, %arg2: i32) -> (i32, i32) {
    %c0_i32 = arith.constant 0 : i32
    return %arg2, %arg1 : i32, i32
  }
  func.func @transform_2(%arg0: i32, %arg1: i32, %arg2: i32) -> (i32, i32) {
    %c0_i32 = arith.constant 0 : i32
    %c0_i32_0 = arith.constant 0 : i32
    return %c0_i32, %arg1 : i32, i32
  }
  func.func @transform_3(%arg0: i32, %arg1: i32, %arg2: i32) -> (i32, i32) {
    %c0_i32 = arith.constant 0 : i32
    return %arg0, %arg1 : i32, i32
  }
}

</mosaic_0001>

<bundles_post_ra>
// kernel: tpu_custom_call.1
= control target key start
LH: loop header
LB: loop body
LE: loop exit
PB: predicated region body
PF: predicated region fallthrough
CT: control target
= control target key end

     0   :  { %s1474_s0 = inlined_call_operand.hbm [shape: f32[16,128], index: 0, kind: input, shape index: {}]   ;;  %s1475_s1 = inlined_call_operand.hbm [shape: f32[128,128], index: 1, kind: input, shape index: {}]   ;;  %s1476_s2 = inlined_call_operand.vmem [shape: f32[1,128], index: 2, kind: input, shape index: {}]   ;;  %s1477_s3 = inlined_call_operand.hbm [shape: f32[128,128], index: 3, kind: input, shape index: {}]   ;;  %s1478_s4 = inlined_call_operand.vmem [shape: f32[1,128], index: 4, kind: input, shape index: {}]   ;;  %s1479_s5 = inlined_call_operand.hbm [shape: f32[128,128], index: 5, kind: input, shape index: {}]   ;;  %s1480_s6 = inlined_call_operand.vmem [shape: f32[1,128], index: 6, kind: input, shape index: {}]   ;;  %s1481_s7 = inlined_call_operand.hbm [shape: f32[16,128], index: 7, kind: output, shape index: {}]  }
   0x1   :  { %1486 = sst [smem:[#allocation15_spill]] %s1475_s1 }
   0x2   :  { %1487 = sst [smem:[#allocation16_spill]] %s1477_s3 }
   0x3   :  { %12 = vsyncpa [#allocation3], 0 }
   0x4   :  { %14 = vsyncpa [#allocation3 + $0x1], 0 }
   0x5   :  { %15 = vsyncpa [#allocation6], 0 }
   0x6   :  { %16 = vsyncpa [#allocation9], 0 }
   0x7   :  { %17 = vsyncpa [#allocation4], 0 }
   0x8   :  { %19 = vsyncpa [#allocation4 + $0x1], 0  ;;  %s1221_s24 = smov 0   ;;  %s1223_s25 = smov 0  }
   0x9   :  { %s1225_s26 = smov 0   ;;  %s1227_s27 = smov 0  }
   0xa LB: > { %s1242_s28 = sadd.s32 4294967295, %s1170_s27   ;;  %s734_s29 = sadd.s32 4294967294, %s1170_s27   ;;  %s1170_s27 = sphi %s1227_s27, %s1509_s27   ;;  %s1166_s26 = sphi %s1225_s26, %s1508_s26   ;;  %s1162_s25 = sphi %s1223_s25, %s1507_s25   ;;  %s1158_s24 = sphi %s1221_s24, %s1506_s24  }
   0xb   : > { %p45_p0 = scmp.ne.s32.totalorder %s1162_s25, %s1158_s24  ;;  %p1482_p1 = scmp.eq.s32.totalorder %s1242_s28, 0 }
   0xc   : > { %p201_p3 = scmp.eq.s32.totalorder %s734_s29, 1  ;;  %p735_p5 = scmp.ge.s32.totalorder %s1170_s27, 1 }
   0xd   : > { %p1251_p4 = por %p1482_p1, %p45_p0  ;;  %p208_p7 = scmp.lt.s32.totalorder %s1170_s27, 3 }
   0xe   : > { %p1256_p6 = por %p201_p3, %p45_p0  ;;  %s1172_s10 = smov [#allocation5]  }
   0xf   : > { %s1488_s30 = scalar_select %p1251_p4, 1, 0 }
  0x10   : > { %s1489_s8 = scalar_select %p1256_p6, 1, 0 }
  0x11   : > { %p1261_p8 = pnand %p735_p5, %p208_p7  ;;  %s220_s11 = sshll.u32 %s1172_s10, 4  ;;  %s221_s11 = int_to_ptr.vmem [resolvable:$true] %s220_s11 }
  0x12   : > { %s1173_s13 = smov [#allocation7]   ;;  %s1174_s15 = smov [#allocation8]  }
  0x13   : > { %s1490_s9 = scalar_select %p1261_p8, 1, 0 }
  0x14   : > { %p927_p9 = pneg %p1261_p8  ;;  %s236_s14 = sshll.u32 %s1173_s13, 4  ;;  %s237_s14 = int_to_ptr.vmem [resolvable:$true] %s236_s14 }
  0x15   : > { %s252_s16 = sshll.u32 %s1174_s15, 4  ;;  %s1003_s17 = scalar_lea.vmem %s221_s11, 2048  ;;  %s253_s16 = int_to_ptr.vmem [resolvable:$true] %s252_s16 }
  0x16   : > { %p1270_p11 = pnand %p927_p9, %p1482_p1  ;;  %p1004_p13 = scmp.ne.s32.totalorder %s221_s11, %s1003_s17 }
  0x17   : > { %p1011_p5 = scmp.lt.s32.totalorder %s221_s11, %s221_s11  ;;  %p1012_p7 = scmp.lt.s32.totalorder %s1003_s17, %s1003_s17 }
  0x18   : > { %p994_p12 = pneg %p1270_p11 }
  0x19   : > { %p1013_p9 = por %p1012_p7, %p1011_p5 }
  0x1a   : > { %p1006_p0 = pnand %p1004_p13, %p994_p12 }
  0x1c   : > { %p1007_p3 = pneg %p1006_p0 }
  0x1e   : > { %p1014_p10 = pnand %p1013_p9, %p1007_p3 }
  0x20   : > { %1017 = shalt.err (!%p1014_p10)
}
  0x21   : > { %s1175_s18 = smov 128   ;;  %s1176_s19 = smov 8  }
  0x22   : > { %s1492_s1 = sld [smem:[#allocation15_spill]]  ;;  %s1029_s22 = scalar_lea.vmem %s237_s14, 2048 }
  0x23   : > { %p1030_p1 = scmp.ne.s32.totalorder %s237_s14, %s1029_s22  ;;  %p1037_p2 = scmp.lt.s32.totalorder %s237_s14, %s237_s14 }
  0x24   : > { %p1038_p6 = scmp.lt.s32.totalorder %s1029_s22, %s1029_s22 }
  0x25   : > { %p1032_p13 = pnand %p1030_p1, %p994_p12 }
  0x26   : > { %p1039_p5 = por %p1038_p6, %p1037_p2 }
  0x27   : > { %p1033_p0 = pneg %p1032_p13 }
  0x28   : > { %930 = dma.hbm_to_vmem [thread:$0]  (!%p1270_p11), %s1492_s1, 2048, %s221_s11, [#allocation6], %s1175_s18, %s1175_s18, %s1176_s19  }
  0x29   : > { %p1040_p3 = pnand %p1039_p5, %p1033_p0 }
  0x2b   : > { %1043 = shalt.err (!%p1040_p3)
}
  0x2c   : > { %s1493_s3 = sld [smem:[#allocation16_spill]]  ;;  %s1055_s10 = scalar_lea.vmem %s253_s16, 2048 }
  0x2d   : > { %p1056_p10 = scmp.ne.s32.totalorder %s253_s16, %s1055_s10  ;;  %p1063_p9 = scmp.lt.s32.totalorder %s253_s16, %s253_s16 }
  0x2e   : > { %p1064_p13 = scmp.lt.s32.totalorder %s1055_s10, %s1055_s10 }
  0x2f   : > { %p1058_p7 = pnand %p1056_p10, %p994_p12 }
  0x30   : > { %p1065_p4 = por %p1064_p13, %p1063_p9 }
  0x31   : > { %p1059_p1 = pneg %p1058_p7 }
  0x32   : > { %933 = dma.hbm_to_vmem [thread:$0]  (!%p1270_p11), %s1493_s3, 2048, %s237_s14, [#allocation6], %s1175_s18, %s1175_s18, %s1176_s19  }
  0x33   : > { %p1066_p2 = pnand %p1065_p4, %p1059_p1 }
  0x35   : > { %1069 = shalt.err (!%p1066_p2)
}
  0x36   : > { %936 = dma.hbm_to_vmem [thread:$0]  (!%p1270_p11), %s1479_s5, 2048, %s253_s16, [#allocation9], %s1175_s18, %s1175_s18, %s1176_s19  }
  0x37   : > { %s1301_s14 = sadd.s32 1, %s1170_s27   ;;  %s32_s12 = sadd.s32 1, %s1166_s26 }
  0x38   : > { %s29_s15 = ssub.s32 %s1170_s27, %s1301_s14  ;;  %p39_p6 = scmp.ne.s32.totalorder %s1166_s26, %s1162_s25 }
  0x39   : > { %p30_p4 = scmp.eq.s32.totalorder %s29_s15, 0  ;;  %p40_p12 = scmp.eq.s32.totalorder %s1170_s27, 0 }
  0x3a   : > { %p948_p0 = scmp.lt.s32.totalorder %s1170_s27, 2  ;;  %p1494_p3 = scmp.eq.s32.totalorder %s1242_s28, 1 }
  0x3b   : > { %s1311_s17 = scalar_select %p30_p4, %s1166_s26, %s32_s12  }
  0x3c   : > { %p41_p5 = por %p40_p12, %p39_p6  ;;  %p1315_p10 = por %p1494_p3, %p39_p6 }
  0x3d   : > { %s269_s21 = sand.u32 1, %s1166_s26   ;;  %s741_s22 = sshll.u32 %s1170_s27, 7 }
  0x3e   : > { %s1495_s20 = scalar_select %p1315_p10, 1, 0 }
  0x3f   : > { %s740_s16 = sshll.u32 %s269_s21, 3  ;;  %s1324_s23 = scalar_lea.hbm %s1474_s0, %s741_s22 }
  0x40   : > { %s273_s29 = scalar_lea.vmem [#allocation2], %s740_s16  ;;  %p1326_p11 = pnand %p948_p0, %p41_p5 }
  0x41   : > { %s280_s10 = sshll.u32 %s273_s29, 4  ;;  %s270_s13 = scalar_lea.sflag [#allocation3], %s269_s21  ;;  %s281_s10 = int_to_ptr.vmem [resolvable:$true] %s280_s10 }
  0x42   : > { %s1070_s15 = scalar_lea.hbm %s1324_s23, 128  ;;  %p1072_p1 = pneg %p1326_p11 }
  0x43   : > { %p1071_p7 = scmp.ne.s32.totalorder %s1324_s23, %s1070_s15  ;;  %s1075_s18 = scalar_lea.hbm %s1474_s0, 256 }
  0x44   : > { %p1076_p2 = scmp.lt.s32.totalorder %s1324_s23, %s1474_s0  ;;  %p1077_p4 = scmp.lt.s32.totalorder %s1075_s18, %s1070_s15 }
  0x45   : > { %p1073_p9 = pnand %p1072_p1, %p1071_p7 }
  0x46   : > { %p1078_p6 = por %p1077_p4, %p1076_p2 }
  0x47   : > { %p1074_p13 = pneg %p1073_p9 }
  0x49   : > { %p1079_p12 = pnand %p1078_p6, %p1074_p13 }
  0x4b   : > { %1082 = shalt.err (!%p1079_p12)
}
  0x4c   : > { %s1083_s29 = scalar_lea.vmem %s281_s10, 128  ;;  %s1177_s21 = smov [#allocation2]  }
  0x4d   : > { %p1084_p0 = scmp.ne.s32.totalorder %s281_s10, %s1083_s29  ;;  %s1088_s1 = sshll.u32 %s1177_s21, 4  ;;  %s1089_s1 = int_to_ptr.vmem [resolvable:$false] %s1088_s1 }
  0x4e   : > { %s1090_s3 = scalar_lea.vmem %s1089_s1, 256  ;;  %p1091_p7 = scmp.lt.s32.totalorder %s281_s10, %s1089_s1 }
  0x4f   : > { %p1086_p5 = pnand %p1084_p0, %p1072_p1  ;;  %p1092_p9 = scmp.lt.s32.totalorder %s1090_s3, %s1083_s29 }
  0x51   : > { %p1087_p3 = pneg %p1086_p5  ;;  %p1093_p10 = por %p1092_p9, %p1091_p7 }
  0x53   : > { %p1094_p8 = pnand %p1093_p10, %p1087_p3 }
  0x55   : > { %1097 = shalt.err (!%p1094_p8)
}
  0x56   : > { %940 = dma.hbm_to_vmem [thread:$0]  (!%p1326_p11), %s1324_s23, 128, %s281_s10, %s270_s13  }
  0x57   : > { %p1497_p13 = scmp.ne.s32.totalorder %s1490_s9, 0 }
  0x58   : > { %s1347_s15 = sand.u32 (!%p1497_p13), 1, %s1162_s25   ;;  %p1498_p8 = scmp.ne.s32.totalorder (!%p1497_p13), %s1488_s30, 0 }
  0x59   : > { %289 = sbr.rel (%p1497_p13) target bundleno = 737 (0x2e1), region = 48  ;;  %s743_s12 = sshll.u32 (!%p1497_p13), %s1347_s15, 3 }
  0x5a   : > { %s292_s1 = scalar_lea.sflag (!%p1497_p13), [#allocation3], %s1347_s15  ;;  %s1353_s3 = scalar_lea.vmem (!%p1497_p13), [#allocation2], %s743_s12 }
  0x5e   : > { %1141 = dma.done.wait (%p1498_p8), %s292_s1, 128  }
  0x5f   : > { %1143 = vsyncadd (%p1498_p8), %s292_s1, 4294967168  ;;  %p1499_p10 = scmp.eq.s32.totalorder %s1242_s28, 0 }
  0x61   : > { %1145 = dma.done.wait (%p1499_p10), [#allocation6], 4096   ;;  %p1500_p11 = pmov %p1499_p10 }
  0x62   : > { %p1501_p1 = pmov %p1499_p10 }
  0x63   : > { %1147 = vsyncadd (%p1500_p11), [#allocation6], 4294963200 }
  0x64   : > { %1149 = dma.done.wait (%p1501_p1), [#allocation9], 2048   ;;  %p1502_p2 = pmov %p1501_p1 }
  0x65   : > { %v1178_v0 = vmov 0.0   ;;  %vm1179_vm0 = vmmov 0   ;;  %v354_v1 = vld [vmem:[#allocation5 + $0x78] sm:$0xff]  ;;  %v353_v2 = vld [vmem:[#allocation5 + $0x70] sm:$0xff]  ;;  %v352_v3 = vld [vmem:[#allocation5 + $0x68] sm:$0xff]  ;;  %s752_s22 = sshll.u32 %s1242_s28, 7 }
  0x66   : > { %1151 = vsyncadd (%p1502_p2), [#allocation9], 4294965248  ;;  %806 = vmatprep.subr.mxu0 %v1178_v0  ;;  %838 = vmatprep.mubr.msk.f32.mxu0 %vm1179_vm0, %v1178_v0  ;;  %v351_v4 = vld [vmem:[#allocation5 + $0x60] sm:$0xff]  ;;  %v448_v5 = vld [vmem:[#allocation7 + $0x78] sm:$0xff]  ;;  %s337_s18 = scalar_lea.vmem [#allocation10], %s743_s12  ;;  %s1437_s21 = scalar_lea.hbm %s1481_s7, %s752_s22 }
  0x67   : > { %841 = vmatprep.subr.mxu1 %v1178_v0  ;;  %873 = vmatprep.mubr.msk.f32.mxu1 %vm1179_vm0, %v1178_v0  ;;  %v350_v6 = vld [vmem:[#allocation5 + $0x58] sm:$0xff]  ;;  %v447_v7 = vld [vmem:[#allocation7 + $0x70] sm:$0xff]  ;;  %v446_v8 = vld [vmem:[#allocation7 + $0x68] sm:$0xff]  ;;  %s635_s19 = sshll.u32 %s337_s18, 4  ;;  %s622_s1 = scalar_lea.sflag [#allocation4], %s1347_s15  ;;  %s636_s19 = int_to_ptr.vmem [resolvable:$true] %s635_s19 }
  0x68   : > { %807 = vmatpush3.msra.mxu0 %v354_v1  ;;  %842 = vmatpush3.msra.mxu1 %v448_v5  ;;  %v349_v9 = vld [vmem:[#allocation5 + $0x50] sm:$0xff]  ;;  %v445_v10 = vld [vmem:[#allocation7 + $0x60] sm:$0xff]  ;;  %v348_v11 = vld [vmem:[#allocation5 + $0x48] sm:$0xff]  ;;  %p1503_p6 = scmp.ne.s32.totalorder %s1495_s20, 0  ;;  %s1180_s28 = smov [#allocation10]  }
  0x69   : > { %808 = vmatprep.subr.mxu0 %v1178_v0  ;;  %843 = vmatprep.subr.mxu1 %v1178_v0  ;;  %v444_v12 = vld [vmem:[#allocation7 + $0x58] sm:$0xff]  ;;  %v347_v13 = vld [vmem:[#allocation5 + $0x40] sm:$0xff]  ;;  %v443_v14 = vld [vmem:[#allocation7 + $0x50] sm:$0xff]  ;;  %s1102_s30 = sshll.u32 %s1180_s28, 4  ;;  %s1103_s30 = int_to_ptr.vmem [resolvable:$false] %s1102_s30 }
  0x6a   : > { %809 = vmatpush3.msra.mxu0 %v353_v2  ;;  %844 = vmatpush3.msra.mxu1 %v447_v7  ;;  %v346_v15 = vld [vmem:[#allocation5 + $0x38] sm:$0xff]  ;;  %v442_v16 = vld [vmem:[#allocation7 + $0x48] sm:$0xff]  ;;  %v345_v17 = vld [vmem:[#allocation5 + $0x30] sm:$0xff]  ;;  %s1104_s12 = scalar_lea.vmem %s1103_s30, 256  ;;  %p1105_p5 = scmp.lt.s32.totalorder %s636_s19, %s1103_s30 }
  0x6b   : > { %810 = vmatprep.subr.mxu0 %v1178_v0  ;;  %845 = vmatprep.subr.mxu1 %v1178_v0  ;;  %v441_v18 = vld [vmem:[#allocation7 + $0x40] sm:$0xff]  ;;  %v344_v19 = vld [vmem:[#allocation5 + $0x28] sm:$0xff]  ;;  %v440_v20 = vld [vmem:[#allocation7 + $0x38] sm:$0xff] }
  0x6c   : > { %811 = vmatpush3.msra.mxu0 %v352_v3  ;;  %846 = vmatpush3.msra.mxu1 %v446_v8  ;;  %v343_v21 = vld [vmem:[#allocation5 + $0x20] sm:$0xff]  ;;  %v439_v22 = vld [vmem:[#allocation7 + $0x30] sm:$0xff]  ;;  %v342_v23 = vld [vmem:[#allocation5 + $0x18] sm:$0xff] }
  0x6d   : > { %812 = vmatprep.subr.mxu0 %v1178_v0  ;;  %847 = vmatprep.subr.mxu1 %v1178_v0  ;;  %v438_v24 = vld [vmem:[#allocation7 + $0x28] sm:$0xff]  ;;  %v341_v25 = vld [vmem:[#allocation5 + $0x10] sm:$0xff]  ;;  %v437_v26 = vld [vmem:[#allocation7 + $0x20] sm:$0xff] }
  0x6e   : > { %813 = vmatpush3.msra.mxu0 %v351_v4  ;;  %848 = vmatpush3.msra.mxu1 %v445_v10  ;;  %v340_v27 = vld [vmem:[#allocation5 + $0x8] sm:$0xff]  ;;  %v436_v28 = vld [vmem:[#allocation7 + $0x18] sm:$0xff]  ;;  %v339_v29 = vld [vmem:[#allocation5] sm:$0xff] }
  0x6f   : > { %814 = vmatprep.subr.mxu0 %v1178_v0  ;;  %849 = vmatprep.subr.mxu1 %v1178_v0  ;;  %v338_v30 = vld [vmem:[%s1353_s3] sm:$0xff]  ;;  %v434_v32 = vld [vmem:[#allocation7 + $0x8] sm:$0xff]  ;;  %v433_v33 = vld [vmem:[#allocation7] sm:$0xff]  ;;  %s1098_s3 = scalar_lea.vmem %s636_s19, 128 }
  0x70   : > { %815 = vmatpush3.msra.mxu0 %v350_v6  ;;  %850 = vmatpush3.msra.mxu1 %v444_v12  ;;  %v435_v31 = vld [vmem:[#allocation7 + $0x10] sm:$0xff]  ;;  %v542_v34 = vld [vmem:[#allocation8 + $0x78] sm:$0xff]  ;;  %v540_v36 = vld [vmem:[#allocation8 + $0x68] sm:$0xff]  ;;  %p1099_p4 = scmp.ne.s32.totalorder %s636_s19, %s1098_s3  ;;  %p1106_p3 = scmp.lt.s32.totalorder %s1104_s12, %s1098_s3 }
  0x71   : > { %816 = vmatprep.subr.mxu0 %v1178_v0  ;;  %851 = vmatprep.subr.mxu1 %v1178_v0  ;;  %v541_v35 = vld [vmem:[#allocation8 + $0x70] sm:$0xff]  ;;  %v539_v37 = vld [vmem:[#allocation8 + $0x60] sm:$0xff]  ;;  %v538_v38 = vld [vmem:[#allocation8 + $0x58] sm:$0xff] }
  0x72   : > { %817 = vmatpush3.msra.mxu0 %v349_v9  ;;  %852 = vmatpush3.msra.mxu1 %v443_v14  ;;  %v537_v39 = vld [vmem:[#allocation8 + $0x50] sm:$0xff]  ;;  %v536_v40 = vld [vmem:[#allocation8 + $0x48] sm:$0xff]  ;;  %v535_v41 = vld [vmem:[#allocation8 + $0x40] sm:$0xff]  ;;  %p1100_p12 = pnand %p1099_p4, %p1503_p6  ;;  %p1107_p7 = por %p1106_p3, %p1105_p5 }
  0x73   : > { %818 = vmatprep.subr.mxu0 %v1178_v0  ;;  %853 = vmatprep.subr.mxu1 %v1178_v0  ;;  %v534_v42 = vld [vmem:[#allocation8 + $0x38] sm:$0xff]  ;;  %v533_v43 = vld [vmem:[#allocation8 + $0x30] sm:$0xff]  ;;  %v532_v44 = vld [vmem:[#allocation8 + $0x28] sm:$0xff] }
  0x74   : > { %819 = vmatpush3.msra.mxu0 %v348_v11  ;;  %854 = vmatpush3.msra.mxu1 %v442_v16  ;;  %v531_v45 = vld [vmem:[#allocation8 + $0x20] sm:$0xff]  ;;  %v530_v46 = vld [vmem:[#allocation8 + $0x18] sm:$0xff]  ;;  %v748_v47 = vld [vmem:[%s1476_s2] ss:$0 sm:$0xff]  ;;  %p1101_p0 = pneg %p1100_p12 }
  0x75   : > { %820 = vmatprep.subr.mxu0 %v1178_v0  ;;  %855 = vmatprep.subr.mxu1 %v1178_v0  ;;  %v529_v52 = vld [vmem:[#allocation8 + $0x10] sm:$0xff]  ;;  %v528_v53 = vld [vmem:[#allocation8 + $0x8] sm:$0xff]  ;;  %v527_v54 = vld [vmem:[#allocation8] sm:$0xff] }
  0x76   : > { %821 = vmatpush3.msra.mxu0 %v347_v13  ;;  %856 = vmatpush3.msra.mxu1 %v441_v18  ;;  %v749_v55 = vld [vmem:[%s1478_s4] ss:$0 sm:$0xff]  ;;  %p1108_p9 = pnand %p1107_p7, %p1101_p0 }
  0x77   : > { %822 = vmatprep.subr.mxu0 %v1178_v0  ;;  %857 = vmatprep.subr.mxu1 %v1178_v0  ;;  %v750_v60 = vld [vmem:[%s1480_s6] ss:$0 sm:$0xff] }
  0x78   : > { %823 = vmatpush3.msra.mxu0 %v346_v15  ;;  %858 = vmatpush3.msra.mxu1 %v440_v20 }
  0x79   : > { %824 = vmatprep.subr.mxu0 %v1178_v0  ;;  %859 = vmatprep.subr.mxu1 %v1178_v0 }
  0x7a   : > { %825 = vmatpush3.msra.mxu0 %v345_v17  ;;  %860 = vmatpush3.msra.mxu1 %v439_v22 }
  0x7b   : > { %826 = vmatprep.subr.mxu0 %v1178_v0  ;;  %861 = vmatprep.subr.mxu1 %v1178_v0 }
  0x7c   : > { %827 = vmatpush3.msra.mxu0 %v344_v19  ;;  %862 = vmatpush3.msra.mxu1 %v438_v24 }
  0x7d   : > { %828 = vmatprep.subr.mxu0 %v1178_v0  ;;  %863 = vmatprep.subr.mxu1 %v1178_v0 }
  0x7e   : > { %829 = vmatpush3.msra.mxu0 %v343_v21  ;;  %864 = vmatpush3.msra.mxu1 %v437_v26 }
  0x7f   : > { %830 = vmatprep.subr.mxu0 %v1178_v0  ;;  %865 = vmatprep.subr.mxu1 %v1178_v0 }
  0x80   : > { %831 = vmatpush3.msra.mxu0 %v342_v23  ;;  %866 = vmatpush3.msra.mxu1 %v436_v28 }
  0x81   : > { %832 = vmatprep.subr.mxu0 %v1178_v0  ;;  %867 = vmatprep.subr.mxu1 %v1178_v0 }
  0x82   : > { %833 = vmatpush3.msra.mxu0 %v341_v25  ;;  %868 = vmatpush3.msra.mxu1 %v435_v31 }
  0x83   : > { %834 = vmatprep.subr.mxu0 %v1178_v0  ;;  %869 = vmatprep.subr.mxu1 %v1178_v0 }
  0x84   : > { %835 = vmatpush3.msra.mxu0 %v340_v27  ;;  %870 = vmatpush3.msra.mxu1 %v434_v32 }
  0x85   : > { %836 = vmatprep.subr.mxu0 %v1178_v0  ;;  %871 = vmatprep.subr.mxu1 %v1178_v0 }
  0x86   : > { %837 = vmatpush3.msra.mxu0 %v339_v29  ;;  %872 = vmatpush3.msra.mxu1 %v433_v33 }
  0x87   : > { %839 = vmatmul.mubr.f32.vlgmr.msra.gmra.mxu0 %v338_v30  ;;  %876 = vmatprep.subr.mxu0 %v1178_v0 }
  0x88   : > { %908 = vmatprep.mubr.msk.f32.mxu0 %vm1179_vm0, %v1178_v0  ;;  %877 = vmatpush3.msra.mxu0 %v542_v34 }
  0x89   : > { %878 = vmatprep.subr.mxu0 %v1178_v0 }
  0x8a   : > { %879 = vmatpush3.msra.mxu0 %v541_v35 }
  0x8b   : > { %880 = vmatprep.subr.mxu0 %v1178_v0 }
  0x8c   : > { %881 = vmatpush3.msra.mxu0 %v540_v36 }
  0x8d   : > { %882 = vmatprep.subr.mxu0 %v1178_v0 }
  0x8e   : > { %883 = vmatpush3.msra.mxu0 %v539_v37 }
  0x8f   : > { %884 = vmatprep.subr.mxu0 %v1178_v0 }
  0x90   : > { %885 = vmatpush3.msra.mxu0 %v538_v38 }
  0x91   : > { %886 = vmatprep.subr.mxu0 %v1178_v0 }
  0x92   : > { %887 = vmatpush3.msra.mxu0 %v537_v39 }
  0x93   : > { %888 = vmatprep.subr.mxu0 %v1178_v0 }
  0x94   : > { %889 = vmatpush3.msra.mxu0 %v536_v40 }
  0x95   : > { %890 = vmatprep.subr.mxu0 %v1178_v0 }
  0x96   : > { %891 = vmatpush3.msra.mxu0 %v535_v41 }
  0x97   : > { %892 = vmatprep.subr.mxu0 %v1178_v0 }
  0x98   : > { %893 = vmatpush3.msra.mxu0 %v534_v42 }
  0x99   : > { %894 = vmatprep.subr.mxu0 %v1178_v0 }
  0x9a   : > { %895 = vmatpush3.msra.mxu0 %v533_v43 }
  0x9b   : > { %896 = vmatprep.subr.mxu0 %v1178_v0 }
  0x9c   : > { %897 = vmatpush3.msra.mxu0 %v532_v44 }
  0x9d   : > { %898 = vmatprep.subr.mxu0 %v1178_v0 }
  0x9e   : > { %899 = vmatpush3.msra.mxu0 %v531_v45 }
  0x9f   : > { %900 = vmatprep.subr.mxu0 %v1178_v0 }
  0xa0   : > { %901 = vmatpush3.msra.mxu0 %v530_v46 }
  0xa1   : > { %902 = vmatprep.subr.mxu0 %v1178_v0 }
  0xa2   : > { %903 = vmatpush3.msra.mxu0 %v529_v52 }
  0xa3   : > { %904 = vmatprep.subr.mxu0 %v1178_v0 }
  0xa4   : > { %905 = vmatpush3.msra.mxu0 %v528_v53 }
  0xa5   : > { %906 = vmatprep.subr.mxu0 %v1178_v0 }
  0xa6   : > { %907 = vmatpush3.msra.mxu0 %v527_v54 }
 0x147   : > { %v428_v48 = vpop.f32.mrf.mxu0 }
 0x148   : > { %v429_v49 = vadd.f32 %v748_v47, %v428_v48 }
 0x149   : > { %v840_v50 = vpop.f32.mrf.mxu0 }
 0x14a   : > { %v432_v51 = vmax.f32 %v429_v49, 0.0 }
 0x14c   : > { %874 = vmatmul.mubr.f32.vlgmr.msra.gmra.mxu1 %v432_v51 }
 0x20c   : > { %v522_v56 = vpop.f32.mrf.mxu1 }
 0x20d   : > { %v523_v57 = vadd.f32 %v749_v55, %v522_v56 }
 0x20e   : > { %v875_v58 = vpop.f32.mrf.mxu1 }
 0x20f   : > { %v526_v59 = vmax.f32 %v523_v57, 0.0 }
 0x211   : > { %909 = vmatmul.mubr.f32.vlgmr.msra.gmra.mxu0 %v526_v59 }
 0x2d1   : > { %v616_v61 = vpop.f32.mrf.mxu0 }
 0x2d2   : > { %v617_v62 = vadd.f32 %v750_v60, %v616_v61 }
 0x2d3   : > { %v910_v63 = vpop.f32.mrf.mxu0 }
 0x2d4   : > { %620 = vst [vmem:[%s337_s18] sm:$0xff] %v617_v62 }
 0x2d5   : > { %1111 = shalt.err (!%p1108_p9)
}
 0x2d6   : > { %s1112_s9 = scalar_lea.hbm %s1437_s21, 128  ;;  %s1116_s10 = scalar_lea.hbm %s1481_s7, 256 }
 0x2d7   : > { %p1113_p13 = scmp.ne.s32.totalorder %s1437_s21, %s1112_s9  ;;  %p1117_p11 = scmp.lt.s32.totalorder %s1437_s21, %s1481_s7 }
 0x2d8   : > { %p1118_p1 = scmp.lt.s32.totalorder %s1116_s10, %s1112_s9 }
 0x2d9   : > { %p1114_p8 = pnand %p1113_p13, %p1503_p6 }
 0x2da   : > { %p1119_p2 = por %p1118_p1, %p1117_p11 }
 0x2db   : > { %p1115_p10 = pneg %p1114_p8 }
 0x2dd   : > { %p1120_p4 = pnand %p1119_p2, %p1115_p10 }
 0x2df   : > { %1123 = shalt.err (!%p1120_p4)
}
 0x2e0   : > { %925 = dma.vmem_to_hbm [thread:$0]  (%p1503_p6), %s636_s19, 128, %s1437_s21, %s622_s1  }
 0x2e1 PF: > { %s647_s22 = sand.u32 1, %s1158_s24   ;;  %p1504_p12 = scmp.ne.s32.totalorder %s1489_s8, 0 }
 0x2e2   : > { %p1505_p0 = scmp.ge.s32.totalorder %s1170_s27, 2  ;;  %s648_s18 = scalar_lea.sflag [#allocation4], %s647_s22 }
 0x2e4   : > { %p942_p5 = pnand %p1505_p0, %p1504_p12 }
 0x2e6   : > { %p943_p3 = pneg %p942_p5 }
 0x2e8   : > { %1153 = dma.done.wait (%p943_p3), %s648_s18, 128  }
 0x2e9   : > { %1155 = vsyncadd (%p943_p3), %s648_s18, 4294967168  ;;  %p22_p7 = scmp.ge.s32.totalorder %s1301_s14, 4   ;;  %s1506_s24 = smov %s1162_s25 }
 0x2ea   : > { %s1507_s25 = smov %s1166_s26  ;;  %s1508_s26 = smov %s1311_s17 }
 0x2eb   : > { %s1509_s27 = smov %s1301_s14  ;;  %24 = sbr.rel (!%p22_p7) target bundleno = 10 (0xa), region = 105 }
 0x2f0   :  { %653 = vsyncpa [#allocation3], 1 }
 0x2f1   :  { %655 = vsyncpa [#allocation3 + $0x1], 1 }
 0x2f2   :  { %656 = vsyncpa [#allocation6], 1 }
 0x2f3   :  { %657 = vsyncpa [#allocation9], 1 }
 0x2f4   :  { %658 = vsyncpa [#allocation4], 1 }
 0x2f5   :  { %660 = vsyncpa [#allocation4 + $0x1], 1 }

// kernel: tpu_custom_call.1
= control target key start
LH: loop header
LB: loop body
LE: loop exit
PB: predicated region body
PF: predicated region fallthrough
CT: control target
= control target key end

     0   :  { %s1474_s0 = inlined_call_operand.hbm [shape: f32[16,128], index: 0, kind: input, shape index: {}]   ;;  %s1475_s1 = inlined_call_operand.hbm [shape: f32[128,128], index: 1, kind: input, shape index: {}]   ;;  %s1476_s2 = inlined_call_operand.vmem [shape: f32[1,128], index: 2, kind: input, shape index: {}]   ;;  %s1477_s3 = inlined_call_operand.hbm [shape: f32[128,128], index: 3, kind: input, shape index: {}]   ;;  %s1478_s4 = inlined_call_operand.vmem [shape: f32[1,128], index: 4, kind: input, shape index: {}]   ;;  %s1479_s5 = inlined_call_operand.hbm [shape: f32[128,128], index: 5, kind: input, shape index: {}]   ;;  %s1480_s6 = inlined_call_operand.vmem [shape: f32[1,128], index: 6, kind: input, shape index: {}]   ;;  %s1481_s7 = inlined_call_operand.hbm [shape: f32[16,128], index: 7, kind: output, shape index: {}]  }
   0x1   :  { %1486 = sst [smem:[#allocation15_spill]] %s1475_s1 }
   0x2   :  { %1487 = sst [smem:[#allocation16_spill]] %s1477_s3 }
   0x3   :  { %12 = vsyncpa [#allocation3], 0 }
   0x4   :  { %14 = vsyncpa [#allocation3 + $0x1], 0 }
   0x5   :  { %15 = vsyncpa [#allocation6], 0 }
   0x6   :  { %16 = vsyncpa [#allocation9], 0 }
   0x7   :  { %17 = vsyncpa [#allocation4], 0 }
   0x8   :  { %19 = vsyncpa [#allocation4 + $0x1], 0  ;;  %s1221_s24 = smov 0   ;;  %s1223_s25 = smov 0  }
   0x9   :  { %s1225_s26 = smov 0   ;;  %s1227_s27 = smov 0  }
   0xa LB: > { %s1242_s28 = sadd.s32 4294967295, %s1170_s27   ;;  %s734_s29 = sadd.s32 4294967294, %s1170_s27   ;;  %s1170_s27 = sphi %s1227_s27, %s1509_s27   ;;  %s1166_s26 = sphi %s1225_s26, %s1508_s26   ;;  %s1162_s25 = sphi %s1223_s25, %s1507_s25   ;;  %s1158_s24 = sphi %s1221_s24, %s1506_s24  }
   0xb   : > { %p45_p0 = scmp.ne.s32.totalorder %s1162_s25, %s1158_s24  ;;  %p1482_p1 = scmp.eq.s32.totalorder %s1242_s28, 0 }
   0xc   : > { %p201_p3 = scmp.eq.s32.totalorder %s734_s29, 1  ;;  %p735_p5 = scmp.ge.s32.totalorder %s1170_s27, 1 }
   0xd   : > { %p1251_p4 = por %p1482_p1, %p45_p0  ;;  %p208_p7 = scmp.lt.s32.totalorder %s1170_s27, 3 }
   0xe   : > { %p1256_p6 = por %p201_p3, %p45_p0  ;;  %s1172_s10 = smov [#allocation5]  }
   0xf   : > { %s1488_s30 = scalar_select %p1251_p4, 1, 0 }
  0x10   : > { %s1489_s8 = scalar_select %p1256_p6, 1, 0 }
  0x11   : > { %p1261_p8 = pnand %p735_p5, %p208_p7  ;;  %s220_s11 = sshll.u32 %s1172_s10, 4  ;;  %s221_s11 = int_to_ptr.vmem [resolvable:$true] %s220_s11 }
  0x12   : > { %s1173_s13 = smov [#allocation7]   ;;  %s1174_s15 = smov [#allocation8]  }
  0x13   : > { %s1490_s9 = scalar_select %p1261_p8, 1, 0 }
  0x14   : > { %p927_p9 = pneg %p1261_p8  ;;  %s236_s14 = sshll.u32 %s1173_s13, 4  ;;  %s237_s14 = int_to_ptr.vmem [resolvable:$true] %s236_s14 }
  0x15   : > { %s252_s16 = sshll.u32 %s1174_s15, 4  ;;  %s1003_s17 = scalar_lea.vmem %s221_s11, 2048  ;;  %s253_s16 = int_to_ptr.vmem [resolvable:$true] %s252_s16 }
  0x16   : > { %p1270_p11 = pnand %p927_p9, %p1482_p1  ;;  %p1004_p13 = scmp.ne.s32.totalorder %s221_s11, %s1003_s17 }
  0x17   : > { %p1011_p5 = scmp.lt.s32.totalorder %s221_s11, %s221_s11  ;;  %p1012_p7 = scmp.lt.s32.totalorder %s1003_s17, %s1003_s17 }
  0x18   : > { %p994_p12 = pneg %p1270_p11 }
  0x19   : > { %p1013_p9 = por %p1012_p7, %p1011_p5 }
  0x1a   : > { %p1006_p0 = pnand %p1004_p13, %p994_p12 }
  0x1c   : > { %p1007_p3 = pneg %p1006_p0 }
  0x1e   : > { %p1014_p10 = pnand %p1013_p9, %p1007_p3 }
  0x20   : > { %1017 = shalt.err (!%p1014_p10)
}
  0x21   : > { %s1175_s18 = smov 128   ;;  %s1176_s19 = smov 8  }
  0x22   : > { %s1492_s1 = sld [smem:[#allocation15_spill]]  ;;  %s1029_s22 = scalar_lea.vmem %s237_s14, 2048 }
  0x23   : > { %p1030_p1 = scmp.ne.s32.totalorder %s237_s14, %s1029_s22  ;;  %p1037_p2 = scmp.lt.s32.totalorder %s237_s14, %s237_s14 }
  0x24   : > { %p1038_p6 = scmp.lt.s32.totalorder %s1029_s22, %s1029_s22 }
  0x25   : > { %p1032_p13 = pnand %p1030_p1, %p994_p12 }
  0x26   : > { %p1039_p5 = por %p1038_p6, %p1037_p2 }
  0x27   : > { %p1033_p0 = pneg %p1032_p13 }
  0x28   : > { %930 = dma.hbm_to_vmem [thread:$0]  (!%p1270_p11), %s1492_s1, 2048, %s221_s11, [#allocation6], %s1175_s18, %s1175_s18, %s1176_s19  }
  0x29   : > { %p1040_p3 = pnand %p1039_p5, %p1033_p0 }
  0x2b   : > { %1043 = shalt.err (!%p1040_p3)
}
  0x2c   : > { %s1493_s3 = sld [smem:[#allocation16_spill]]  ;;  %s1055_s10 = scalar_lea.vmem %s253_s16, 2048 }
  0x2d   : > { %p1056_p10 = scmp.ne.s32.totalorder %s253_s16, %s1055_s10  ;;  %p1063_p9 = scmp.lt.s32.totalorder %s253_s16, %s253_s16 }
  0x2e   : > { %p1064_p13 = scmp.lt.s32.totalorder %s1055_s10, %s1055_s10 }
  0x2f   : > { %p1058_p7 = pnand %p1056_p10, %p994_p12 }
  0x30   : > { %p1065_p4 = por %p1064_p13, %p1063_p9 }
  0x31   : > { %p1059_p1 = pneg %p1058_p7 }
  0x32   : > { %933 = dma.hbm_to_vmem [thread:$0]  (!%p1270_p11), %s1493_s3, 2048, %s237_s14, [#allocation6], %s1175_s18, %s1175_s18, %s1176_s19  }
  0x33   : > { %p1066_p2 = pnand %p1065_p4, %p1059_p1 }
  0x35   : > { %1069 = shalt.err (!%p1066_p2)
}
  0x36   : > { %936 = dma.hbm_to_vmem [thread:$0]  (!%p1270_p11), %s1479_s5, 2048, %s253_s16, [#allocation9], %s1175_s18, %s1175_s18, %s1176_s19  }
  0x37   : > { %s1301_s14 = sadd.s32 1, %s1170_s27   ;;  %s32_s12 = sadd.s32 1, %s1166_s26 }
  0x38   : > { %s29_s15 = ssub.s32 %s1170_s27, %s1301_s14  ;;  %p39_p6 = scmp.ne.s32.totalorder %s1166_s26, %s1162_s25 }
  0x39   : > { %p30_p4 = scmp.eq.s32.totalorder %s29_s15, 0  ;;  %p40_p12 = scmp.eq.s32.totalorder %s1170_s27, 0 }
  0x3a   : > { %p948_p0 = scmp.lt.s32.totalorder %s1170_s27, 2  ;;  %p1494_p3 = scmp.eq.s32.totalorder %s1242_s28, 1 }
  0x3b   : > { %s1311_s17 = scalar_select %p30_p4, %s1166_s26, %s32_s12  }
  0x3c   : > { %p41_p5 = por %p40_p12, %p39_p6  ;;  %p1315_p10 = por %p1494_p3, %p39_p6 }
  0x3d   : > { %s269_s21 = sand.u32 1, %s1166_s26   ;;  %s741_s22 = sshll.u32 %s1170_s27, 7 }
  0x3e   : > { %s1495_s20 = scalar_select %p1315_p10, 1, 0 }
  0x3f   : > { %s740_s16 = sshll.u32 %s269_s21, 3  ;;  %s1324_s23 = scalar_lea.hbm %s1474_s0, %s741_s22 }
  0x40   : > { %s273_s29 = scalar_lea.vmem [#allocation2], %s740_s16  ;;  %p1326_p11 = pnand %p948_p0, %p41_p5 }
  0x41   : > { %s280_s10 = sshll.u32 %s273_s29, 4  ;;  %s270_s13 = scalar_lea.sflag [#allocation3], %s269_s21  ;;  %s281_s10 = int_to_ptr.vmem [resolvable:$true] %s280_s10 }
  0x42   : > { %s1070_s15 = scalar_lea.hbm %s1324_s23, 128  ;;  %p1072_p1 = pneg %p1326_p11 }
  0x43   : > { %p1071_p7 = scmp.ne.s32.totalorder %s1324_s23, %s1070_s15  ;;  %s1075_s18 = scalar_lea.hbm %s1474_s0, 256 }
  0x44   : > { %p1076_p2 = scmp.lt.s32.totalorder %s1324_s23, %s1474_s0  ;;  %p1077_p4 = scmp.lt.s32.totalorder %s1075_s18, %s1070_s15 }
  0x45   : > { %p1073_p9 = pnand %p1072_p1, %p1071_p7 }
  0x46   : > { %p1078_p6 = por %p1077_p4, %p1076_p2 }
  0x47   : > { %p1074_p13 = pneg %p1073_p9 }
  0x49   : > { %p1079_p12 = pnand %p1078_p6, %p1074_p13 }
  0x4b   : > { %1082 = shalt.err (!%p1079_p12)
}
  0x4c   : > { %s1083_s29 = scalar_lea.vmem %s281_s10, 128  ;;  %s1177_s21 = smov [#allocation2]  }
  0x4d   : > { %p1084_p0 = scmp.ne.s32.totalorder %s281_s10, %s1083_s29  ;;  %s1088_s1 = sshll.u32 %s1177_s21, 4  ;;  %s1089_s1 = int_to_ptr.vmem [resolvable:$false] %s1088_s1 }
  0x4e   : > { %s1090_s3 = scalar_lea.vmem %s1089_s1, 256  ;;  %p1091_p7 = scmp.lt.s32.totalorder %s281_s10, %s1089_s1 }
  0x4f   : > { %p1086_p5 = pnand %p1084_p0, %p1072_p1  ;;  %p1092_p9 = scmp.lt.s32.totalorder %s1090_s3, %s1083_s29 }
  0x51   : > { %p1087_p3 = pneg %p1086_p5  ;;  %p1093_p10 = por %p1092_p9, %p1091_p7 }
  0x53   : > { %p1094_p8 = pnand %p1093_p10, %p1087_p3 }
  0x55   : > { %1097 = shalt.err (!%p1094_p8)
}
  0x56   : > { %940 = dma.hbm_to_vmem [thread:$0]  (!%p1326_p11), %s1324_s23, 128, %s281_s10, %s270_s13  }
  0x57   : > { %p1497_p13 = scmp.ne.s32.totalorder %s1490_s9, 0 }
  0x58   : > { %s1347_s15 = sand.u32 (!%p1497_p13), 1, %s1162_s25   ;;  %p1498_p8 = scmp.ne.s32.totalorder (!%p1497_p13), %s1488_s30, 0 }
  0x59   : > { %289 = sbr.rel (%p1497_p13) target bundleno = 737 (0x2e1), region = 48  ;;  %s743_s12 = sshll.u32 (!%p1497_p13), %s1347_s15, 3 }
  0x5a   : > { %s292_s1 = scalar_lea.sflag (!%p1497_p13), [#allocation3], %s1347_s15  ;;  %s1353_s3 = scalar_lea.vmem (!%p1497_p13), [#allocation2], %s743_s12 }
  0x5e   : > { %1141 = dma.done.wait (%p1498_p8), %s292_s1, 128  }
  0x5f   : > { %1143 = vsyncadd (%p1498_p8), %s292_s1, 4294967168  ;;  %p1499_p10 = scmp.eq.s32.totalorder %s1242_s28, 0 }
  0x61   : > { %1145 = dma.done.wait (%p1499_p10), [#allocation6], 4096   ;;  %p1500_p11 = pmov %p1499_p10 }
  0x62   : > { %p1501_p1 = pmov %p1499_p10 }
  0x63   : > { %1147 = vsyncadd (%p1500_p11), [#allocation6], 4294963200 }
  0x64   : > { %1149 = dma.done.wait (%p1501_p1), [#allocation9], 2048   ;;  %p1502_p2 = pmov %p1501_p1 }
  0x65   : > { %v1178_v0 = vmov 0.0   ;;  %vm1179_vm0 = vmmov 0   ;;  %v354_v1 = vld [vmem:[#allocation5 + $0x78] sm:$0xff]  ;;  %v353_v2 = vld [vmem:[#allocation5 + $0x70] sm:$0xff]  ;;  %v352_v3 = vld [vmem:[#allocation5 + $0x68] sm:$0xff]  ;;  %s752_s22 = sshll.u32 %s1242_s28, 7 }
  0x66   : > { %1151 = vsyncadd (%p1502_p2), [#allocation9], 4294965248  ;;  %806 = vmatprep.subr.mxu0 %v1178_v0  ;;  %838 = vmatprep.mubr.msk.f32.mxu0 %vm1179_vm0, %v1178_v0  ;;  %v351_v4 = vld [vmem:[#allocation5 + $0x60] sm:$0xff]  ;;  %v448_v5 = vld [vmem:[#allocation7 + $0x78] sm:$0xff]  ;;  %s337_s18 = scalar_lea.vmem [#allocation10], %s743_s12  ;;  %s1437_s21 = scalar_lea.hbm %s1481_s7, %s752_s22 }
  0x67   : > { %841 = vmatprep.subr.mxu1 %v1178_v0  ;;  %873 = vmatprep.mubr.msk.f32.mxu1 %vm1179_vm0, %v1178_v0  ;;  %v350_v6 = vld [vmem:[#allocation5 + $0x58] sm:$0xff]  ;;  %v447_v7 = vld [vmem:[#allocation7 + $0x70] sm:$0xff]  ;;  %v446_v8 = vld [vmem:[#allocation7 + $0x68] sm:$0xff]  ;;  %s635_s19 = sshll.u32 %s337_s18, 4  ;;  %s622_s1 = scalar_lea.sflag [#allocation4], %s1347_s15  ;;  %s636_s19 = int_to_ptr.vmem [resolvable:$true] %s635_s19 }
  0x68   : > { %807 = vmatpush3.msra.mxu0 %v354_v1  ;;  %842 = vmatpush3.msra.mxu1 %v448_v5  ;;  %v349_v9 = vld [vmem:[#allocation5 + $0x50] sm:$0xff]  ;;  %v445_v10 = vld [vmem:[#allocation7 + $0x60] sm:$0xff]  ;;  %v348_v11 = vld [vmem:[#allocation5 + $0x48] sm:$0xff]  ;;  %p1503_p6 = scmp.ne.s32.totalorder %s1495_s20, 0  ;;  %s1180_s28 = smov [#allocation10]  }
  0x69   : > { %808 = vmatprep.subr.mxu0 %v1178_v0  ;;  %843 = vmatprep.subr.mxu1 %v1178_v0  ;;  %v444_v12 = vld [vmem:[#allocation7 + $0x58] sm:$0xff]  ;;  %v347_v13 = vld [vmem:[#allocation5 + $0x40] sm:$0xff]  ;;  %v443_v14 = vld [vmem:[#allocation7 + $0x50] sm:$0xff]  ;;  %s1102_s30 = sshll.u32 %s1180_s28, 4  ;;  %s1103_s30 = int_to_ptr.vmem [resolvable:$false] %s1102_s30 }
  0x6a   : > { %809 = vmatpush3.msra.mxu0 %v353_v2  ;;  %844 = vmatpush3.msra.mxu1 %v447_v7  ;;  %v346_v15 = vld [vmem:[#allocation5 + $0x38] sm:$0xff]  ;;  %v442_v16 = vld [vmem:[#allocation7 + $0x48] sm:$0xff]  ;;  %v345_v17 = vld [vmem:[#allocation5 + $0x30] sm:$0xff]  ;;  %s1104_s12 = scalar_lea.vmem %s1103_s30, 256  ;;  %p1105_p5 = scmp.lt.s32.totalorder %s636_s19, %s1103_s30 }
  0x6b   : > { %810 = vmatprep.subr.mxu0 %v1178_v0  ;;  %845 = vmatprep.subr.mxu1 %v1178_v0  ;;  %v441_v18 = vld [vmem:[#allocation7 + $0x40] sm:$0xff]  ;;  %v344_v19 = vld [vmem:[#allocation5 + $0x28] sm:$0xff]  ;;  %v440_v20 = vld [vmem:[#allocation7 + $0x38] sm:$0xff] }
  0x6c   : > { %811 = vmatpush3.msra.mxu0 %v352_v3  ;;  %846 = vmatpush3.msra.mxu1 %v446_v8  ;;  %v343_v21 = vld [vmem:[#allocation5 + $0x20] sm:$0xff]  ;;  %v439_v22 = vld [vmem:[#allocation7 + $0x30] sm:$0xff]  ;;  %v342_v23 = vld [vmem:[#allocation5 + $0x18] sm:$0xff] }
  0x6d   : > { %812 = vmatprep.subr.mxu0 %v1178_v0  ;;  %847 = vmatprep.subr.mxu1 %v1178_v0  ;;  %v438_v24 = vld [vmem:[#allocation7 + $0x28] sm:$0xff]  ;;  %v341_v25 = vld [vmem:[#allocation5 + $0x10] sm:$0xff]  ;;  %v437_v26 = vld [vmem:[#allocation7 + $0x20] sm:$0xff] }
  0x6e   : > { %813 = vmatpush3.msra.mxu0 %v351_v4  ;;  %848 = vmatpush3.msra.mxu1 %v445_v10  ;;  %v340_v27 = vld [vmem:[#allocation5 + $0x8] sm:$0xff]  ;;  %v436_v28 = vld [vmem:[#allocation7 + $0x18] sm:$0xff]  ;;  %v339_v29 = vld [vmem:[#allocation5] sm:$0xff] }
  0x6f   : > { %814 = vmatprep.subr.mxu0 %v1178_v0  ;;  %849 = vmatprep.subr.mxu1 %v1178_v0  ;;  %v338_v30 = vld [vmem:[%s1353_s3] sm:$0xff]  ;;  %v434_v32 = vld [vmem:[#allocation7 + $0x8] sm:$0xff]  ;;  %v433_v33 = vld [vmem:[#allocation7] sm:$0xff]  ;;  %s1098_s3 = scalar_lea.vmem %s636_s19, 128 }
  0x70   : > { %815 = vmatpush3.msra.mxu0 %v350_v6  ;;  %850 = vmatpush3.msra.mxu1 %v444_v12  ;;  %v435_v31 = vld [vmem:[#allocation7 + $0x10] sm:$0xff]  ;;  %v542_v34 = vld [vmem:[#allocation8 + $0x78] sm:$0xff]  ;;  %v540_v36 = vld [vmem:[#allocation8 + $0x68] sm:$0xff]  ;;  %p1099_p4 = scmp.ne.s32.totalorder %s636_s19, %s1098_s3  ;;  %p1106_p3 = scmp.lt.s32.totalorder %s1104_s12, %s1098_s3 }
  0x71   : > { %816 = vmatprep.subr.mxu0 %v1178_v0  ;;  %851 = vmatprep.subr.mxu1 %v1178_v0  ;;  %v541_v35 = vld [vmem:[#allocation8 + $0x70] sm:$0xff]  ;;  %v539_v37 = vld [vmem:[#allocation8 + $0x60] sm:$0xff]  ;;  %v538_v38 = vld [vmem:[#allocation8 + $0x58] sm:$0xff] }
  0x72   : > { %817 = vmatpush3.msra.mxu0 %v349_v9  ;;  %852 = vmatpush3.msra.mxu1 %v443_v14  ;;  %v537_v39 = vld [vmem:[#allocation8 + $0x50] sm:$0xff]  ;;  %v536_v40 = vld [vmem:[#allocation8 + $0x48] sm:$0xff]  ;;  %v535_v41 = vld [vmem:[#allocation8 + $0x40] sm:$0xff]  ;;  %p1100_p12 = pnand %p1099_p4, %p1503_p6  ;;  %p1107_p7 = por %p1106_p3, %p1105_p5 }
  0x73   : > { %818 = vmatprep.subr.mxu0 %v1178_v0  ;;  %853 = vmatprep.subr.mxu1 %v1178_v0  ;;  %v534_v42 = vld [vmem:[#allocation8 + $0x38] sm:$0xff]  ;;  %v533_v43 = vld [vmem:[#allocation8 + $0x30] sm:$0xff]  ;;  %v532_v44 = vld [vmem:[#allocation8 + $0x28] sm:$0xff] }
  0x74   : > { %819 = vmatpush3.msra.mxu0 %v348_v11  ;;  %854 = vmatpush3.msra.mxu1 %v442_v16  ;;  %v531_v45 = vld [vmem:[#allocation8 + $0x20] sm:$0xff]  ;;  %v530_v46 = vld [vmem:[#allocation8 + $0x18] sm:$0xff]  ;;  %v748_v47 = vld [vmem:[%s1476_s2] ss:$0 sm:$0xff]  ;;  %p1101_p0 = pneg %p1100_p12 }
  0x75   : > { %820 = vmatprep.subr.mxu0 %v1178_v0  ;;  %855 = vmatprep.subr.mxu1 %v1178_v0  ;;  %v529_v52 = vld [vmem:[#allocation8 + $0x10] sm:$0xff]  ;;  %v528_v53 = vld [vmem:[#allocation8 + $0x8] sm:$0xff]  ;;  %v527_v54 = vld [vmem:[#allocation8] sm:$0xff] }
  0x76   : > { %821 = vmatpush3.msra.mxu0 %v347_v13  ;;  %856 = vmatpush3.msra.mxu1 %v441_v18  ;;  %v749_v55 = vld [vmem:[%s1478_s4] ss:$0 sm:$0xff]  ;;  %p1108_p9 = pnand %p1107_p7, %p1101_p0 }
  0x77   : > { %822 = vmatprep.subr.mxu0 %v1178_v0  ;;  %857 = vmatprep.subr.mxu1 %v1178_v0  ;;  %v750_v60 = vld [vmem:[%s1480_s6] ss:$0 sm:$0xff] }
  0x78   : > { %823 = vmatpush3.msra.mxu0 %v346_v15  ;;  %858 = vmatpush3.msra.mxu1 %v440_v20 }
  0x79   : > { %824 = vmatprep.subr.mxu0 %v1178_v0  ;;  %859 = vmatprep.subr.mxu1 %v1178_v0 }
  0x7a   : > { %825 = vmatpush3.msra.mxu0 %v345_v17  ;;  %860 = vmatpush3.msra.mxu1 %v439_v22 }
  0x7b   : > { %826 = vmatprep.subr.mxu0 %v1178_v0  ;;  %861 = vmatprep.subr.mxu1 %v1178_v0 }
  0x7c   : > { %827 = vmatpush3.msra.mxu0 %v344_v19  ;;  %862 = vmatpush3.msra.mxu1 %v438_v24 }
  0x7d   : > { %828 = vmatprep.subr.mxu0 %v1178_v0  ;;  %863 = vmatprep.subr.mxu1 %v1178_v0 }
  0x7e   : > { %829 = vmatpush3.msra.mxu0 %v343_v21  ;;  %864 = vmatpush3.msra.mxu1 %v437_v26 }
  0x7f   : > { %830 = vmatprep.subr.mxu0 %v1178_v0  ;;  %865 = vmatprep.subr.mxu1 %v1178_v0 }
  0x80   : > { %831 = vmatpush3.msra.mxu0 %v342_v23  ;;  %866 = vmatpush3.msra.mxu1 %v436_v28 }
  0x81   : > { %832 = vmatprep.subr.mxu0 %v1178_v0  ;;  %867 = vmatprep.subr.mxu1 %v1178_v0 }
  0x82   : > { %833 = vmatpush3.msra.mxu0 %v341_v25  ;;  %868 = vmatpush3.msra.mxu1 %v435_v31 }
  0x83   : > { %834 = vmatprep.subr.mxu0 %v1178_v0  ;;  %869 = vmatprep.subr.mxu1 %v1178_v0 }
  0x84   : > { %835 = vmatpush3.msra.mxu0 %v340_v27  ;;  %870 = vmatpush3.msra.mxu1 %v434_v32 }
  0x85   : > { %836 = vmatprep.subr.mxu0 %v1178_v0  ;;  %871 = vmatprep.subr.mxu1 %v1178_v0 }
  0x86   : > { %837 = vmatpush3.msra.mxu0 %v339_v29  ;;  %872 = vmatpush3.msra.mxu1 %v433_v33 }
  0x87   : > { %839 = vmatmul.mubr.f32.vlgmr.msra.gmra.mxu0 %v338_v30  ;;  %876 = vmatprep.subr.mxu0 %v1178_v0 }
  0x88   : > { %908 = vmatprep.mubr.msk.f32.mxu0 %vm1179_vm0, %v1178_v0  ;;  %877 = vmatpush3.msra.mxu0 %v542_v34 }
  0x89   : > { %878 = vmatprep.subr.mxu0 %v1178_v0 }
  0x8a   : > { %879 = vmatpush3.msra.mxu0 %v541_v35 }
  0x8b   : > { %880 = vmatprep.subr.mxu0 %v1178_v0 }
  0x8c   : > { %881 = vmatpush3.msra.mxu0 %v540_v36 }
  0x8d   : > { %882 = vmatprep.subr.mxu0 %v1178_v0 }
  0x8e   : > { %883 = vmatpush3.msra.mxu0 %v539_v37 }
  0x8f   : > { %884 = vmatprep.subr.mxu0 %v1178_v0 }
  0x90   : > { %885 = vmatpush3.msra.mxu0 %v538_v38 }
  0x91   : > { %886 = vmatprep.subr.mxu0 %v1178_v0 }
  0x92   : > { %887 = vmatpush3.msra.mxu0 %v537_v39 }
  0x93   : > { %888 = vmatprep.subr.mxu0 %v1178_v0 }
  0x94   : > { %889 = vmatpush3.msra.mxu0 %v536_v40 }
  0x95   : > { %890 = vmatprep.subr.mxu0 %v1178_v0 }
  0x96   : > { %891 = vmatpush3.msra.mxu0 %v535_v41 }
  0x97   : > { %892 = vmatprep.subr.mxu0 %v1178_v0 }
  0x98   : > { %893 = vmatpush3.msra.mxu0 %v534_v42 }
  0x99   : > { %894 = vmatprep.subr.mxu0 %v1178_v0 }
  0x9a   : > { %895 = vmatpush3.msra.mxu0 %v533_v43 }
  0x9b   : > { %896 = vmatprep.subr.mxu0 %v1178_v0 }
  0x9c   : > { %897 = vmatpush3.msra.mxu0 %v532_v44 }
  0x9d   : > { %898 = vmatprep.subr.mxu0 %v1178_v0 }
  0x9e   : > { %899 = vmatpush3.msra.mxu0 %v531_v45 }
  0x9f   : > { %900 = vmatprep.subr.mxu0 %v1178_v0 }
  0xa0   : > { %901 = vmatpush3.msra.mxu0 %v530_v46 }
  0xa1   : > { %902 = vmatprep.subr.mxu0 %v1178_v0 }
  0xa2   : > { %903 = vmatpush3.msra.mxu0 %v529_v52 }
  0xa3   : > { %904 = vmatprep.subr.mxu0 %v1178_v0 }
  0xa4   : > { %905 = vmatpush3.msra.mxu0 %v528_v53 }
  0xa5   : > { %906 = vmatprep.subr.mxu0 %v1178_v0 }
  0xa6   : > { %907 = vmatpush3.msra.mxu0 %v527_v54 }
 0x147   : > { %v428_v48 = vpop.f32.mrf.mxu0 }
 0x148   : > { %v429_v49 = vadd.f32 %v748_v47, %v428_v48 }
 0x149   : > { %v840_v50 = vpop.f32.mrf.mxu0 }
 0x14a   : > { %v432_v51 = vmax.f32 %v429_v49, 0.0 }
 0x14c   : > { %874 = vmatmul.mubr.f32.vlgmr.msra.gmra.mxu1 %v432_v51 }
 0x20c   : > { %v522_v56 = vpop.f32.mrf.mxu1 }
 0x20d   : > { %v523_v57 = vadd.f32 %v749_v55, %v522_v56 }
 0x20e   : > { %v875_v58 = vpop.f32.mrf.mxu1 }
 0x20f   : > { %v526_v59 = vmax.f32 %v523_v57, 0.0 }
 0x211   : > { %909 = vmatmul.mubr.f32.vlgmr.msra.gmra.mxu0 %v526_v59 }
 0x2d1   : > { %v616_v61 = vpop.f32.mrf.mxu0 }
 0x2d2   : > { %v617_v62 = vadd.f32 %v750_v60, %v616_v61 }
 0x2d3   : > { %v910_v63 = vpop.f32.mrf.mxu0 }
 0x2d4   : > { %620 = vst [vmem:[%s337_s18] sm:$0xff] %v617_v62 }
 0x2d5   : > { %1111 = shalt.err (!%p1108_p9)
}
 0x2d6   : > { %s1112_s9 = scalar_lea.hbm %s1437_s21, 128  ;;  %s1116_s10 = scalar_lea.hbm %s1481_s7, 256 }
 0x2d7   : > { %p1113_p13 = scmp.ne.s32.totalorder %s1437_s21, %s1112_s9  ;;  %p1117_p11 = scmp.lt.s32.totalorder %s1437_s21, %s1481_s7 }
 0x2d8   : > { %p1118_p1 = scmp.lt.s32.totalorder %s1116_s10, %s1112_s9 }
 0x2d9   : > { %p1114_p8 = pnand %p1113_p13, %p1503_p6 }
 0x2da   : > { %p1119_p2 = por %p1118_p1, %p1117_p11 }
 0x2db   : > { %p1115_p10 = pneg %p1114_p8 }
 0x2dd   : > { %p1120_p4 = pnand %p1119_p2, %p1115_p10 }
 0x2df   : > { %1123 = shalt.err (!%p1120_p4)
}
 0x2e0   : > { %925 = dma.vmem_to_hbm [thread:$0]  (%p1503_p6), %s636_s19, 128, %s1437_s21, %s622_s1  }
 0x2e1 PF: > { %s647_s22 = sand.u32 1, %s1158_s24   ;;  %p1504_p12 = scmp.ne.s32.totalorder %s1489_s8, 0 }
 0x2e2   : > { %p1505_p0 = scmp.ge.s32.totalorder %s1170_s27, 2  ;;  %s648_s18 = scalar_lea.sflag [#allocation4], %s647_s22 }
 0x2e4   : > { %p942_p5 = pnand %p1505_p0, %p1504_p12 }
 0x2e6   : > { %p943_p3 = pneg %p942_p5 }
 0x2e8   : > { %1153 = dma.done.wait (%p943_p3), %s648_s18, 128  }
 0x2e9   : > { %1155 = vsyncadd (%p943_p3), %s648_s18, 4294967168  ;;  %p22_p7 = scmp.ge.s32.totalorder %s1301_s14, 4   ;;  %s1506_s24 = smov %s1162_s25 }
 0x2ea   : > { %s1507_s25 = smov %s1166_s26  ;;  %s1508_s26 = smov %s1311_s17 }
 0x2eb   : > { %s1509_s27 = smov %s1301_s14  ;;  %24 = sbr.rel (!%p22_p7) target bundleno = 10 (0xa), region = 105 }
 0x2f0   :  { %653 = vsyncpa [#allocation3], 1 }
 0x2f1   :  { %655 = vsyncpa [#allocation3 + $0x1], 1 }
 0x2f2   :  { %656 = vsyncpa [#allocation6], 1 }
 0x2f3   :  { %657 = vsyncpa [#allocation9], 1 }
 0x2f4   :  { %658 = vsyncpa [#allocation4], 1 }
 0x2f5   :  { %660 = vsyncpa [#allocation4 + $0x1], 1 }

// kernel: tpu_custom_call.1
= control target key start
LH: loop header
LB: loop body
LE: loop exit
PB: predicated region body
PF: predicated region fallthrough
CT: control target
= control target key end

     0   :  { %8 = vsyncpa [#allocation4], 0  ;;  %s355_s0 = inlined_call_operand.hbm [shape: f32[16,128], index: 0, kind: input, shape index: {}]   ;;  %s356_s1 = inlined_call_operand.hbm [shape: f32[128,128], index: 1, kind: input, shape index: {}]   ;;  %s357_s2 = inlined_call_operand.vmem [shape: f32[1,128], index: 2, kind: input, shape index: {}]   ;;  %s358_s3 = inlined_call_operand.hbm [shape: f32[16,128], index: 3, kind: output, shape index: {}]  }
   0x1   :  { %9 = vsyncpa [#allocation7], 0 }
   0x2   :  { %10 = vsyncpa [#allocation5], 0  ;;  %s309_s12 = smov [#allocation3]  }
   0x3   :  { %s16_s13 = sshll.u32 %s309_s12, 4  ;;  %s17_s13 = int_to_ptr.vmem [resolvable:$true] %s16_s13 }
   0x4   :  { %s251_s14 = scalar_lea.vmem %s17_s13, 256  ;;  %p256_p1 = scmp.lt.s32.totalorder %s17_s13, %s17_s13 }
   0x5   :  { %p252_p0 = scmp.ne.s32.totalorder %s17_s13, %s251_s14  ;;  %p257_p2 = scmp.lt.s32.totalorder %s251_s14, %s251_s14 }
   0x7   :  { %p258_p3 = por %p257_p2, %p256_p1 }
   0x9   :  { %p259_p4 = pnand %p258_p3, %p252_p0 }
   0xb   :  { %262 = shalt.err (!%p259_p4)
}
   0xc   :  { %s310_s15 = smov 128   ;;  %s311_s16 = smov 8  }
   0xd   :  { %22 = dma.hbm_to_vmem [thread:$0]  %s355_s0, 256, %s17_s13, [#allocation4], %s310_s15, %s310_s15, %s311_s16  }
   0xe   :  { %s312_s19 = smov [#allocation6]  }
   0xf   :  { %s28_s20 = sshll.u32 %s312_s19, 4  ;;  %s29_s20 = int_to_ptr.vmem [resolvable:$true] %s28_s20 }
  0x10   :  { %s271_s21 = scalar_lea.vmem %s29_s20, 2048  ;;  %p276_p6 = scmp.lt.s32.totalorder %s29_s20, %s29_s20 }
  0x11   :  { %p272_p5 = scmp.ne.s32.totalorder %s29_s20, %s271_s21  ;;  %p277_p7 = scmp.lt.s32.totalorder %s271_s21, %s271_s21 }
  0x13   :  { %p278_p8 = por %p277_p7, %p276_p6 }
  0x15   :  { %p279_p9 = pnand %p278_p8, %p272_p5 }
  0x17   :  { %282 = shalt.err (!%p279_p9)
}
  0x18   :  { %34 = dma.hbm_to_vmem [thread:$0]  %s356_s1, 2048, %s29_s20, [#allocation7], %s310_s15, %s310_s15, %s311_s16  }
  0x19   :  { %303 = dma.done.wait [#allocation4], 256  }
  0x1a   :  { %304 = vsyncadd [#allocation4], 4294967040 }
  0x1b   :  { %305 = dma.done.wait [#allocation7], 2048  }
  0x1c   :  { %306 = vsyncadd [#allocation7], 4294965248  ;;  %v68_v0 = vld [vmem:[#allocation6 + $0x78] sm:$0xff]  ;;  %v67_v1 = vld [vmem:[#allocation6 + $0x70] sm:$0xff]  ;;  %s313_s24 = smov [#allocation8]  }
  0x1d   :  { %203 = vmatprep.subr.mxu0 %v68_v0  ;;  %v66_v2 = vld [vmem:[#allocation6 + $0x68] sm:$0xff]  ;;  %v65_v3 = vld [vmem:[#allocation6 + $0x60] sm:$0xff]  ;;  %v49_v4 = vld [vmem:[#allocation3] sm:$0xff]  ;;  %s171_s25 = sshll.u32 %s313_s24, 4  ;;  %s172_s25 = int_to_ptr.vmem [resolvable:$true] %s171_s25 }
  0x1e   :  { %204 = vmatpush3.msra.mxu0 %v68_v0  ;;  %v64_v5 = vld [vmem:[#allocation6 + $0x58] sm:$0xff]  ;;  %235 = vmatprep.mubr.f32.mxu0 %v49_v4  ;;  %v63_v6 = vld [vmem:[#allocation6 + $0x50] sm:$0xff]  ;;  %v62_v7 = vld [vmem:[#allocation6 + $0x48] sm:$0xff]  ;;  %s283_s26 = scalar_lea.vmem %s172_s25, 256  ;;  %p288_p11 = scmp.lt.s32.totalorder %s172_s25, %s172_s25 }
  0x1f   :  { %205 = vmatprep.subr.mxu0 %v67_v1  ;;  %v61_v8 = vld [vmem:[#allocation6 + $0x40] sm:$0xff]  ;;  %v60_v9 = vld [vmem:[#allocation6 + $0x38] sm:$0xff]  ;;  %v59_v10 = vld [vmem:[#allocation6 + $0x30] sm:$0xff]  ;;  %p284_p10 = scmp.ne.s32.totalorder %s172_s25, %s283_s26  ;;  %p289_p12 = scmp.lt.s32.totalorder %s283_s26, %s283_s26 }
  0x20   :  { %206 = vmatpush3.msra.mxu0 %v67_v1  ;;  %v58_v11 = vld [vmem:[#allocation6 + $0x28] sm:$0xff]  ;;  %v57_v12 = vld [vmem:[#allocation6 + $0x20] sm:$0xff]  ;;  %v56_v13 = vld [vmem:[#allocation6 + $0x18] sm:$0xff] }
  0x21   :  { %207 = vmatprep.subr.mxu0 %v66_v2  ;;  %v55_v14 = vld [vmem:[#allocation6 + $0x10] sm:$0xff]  ;;  %v54_v15 = vld [vmem:[#allocation6 + $0x8] sm:$0xff]  ;;  %v53_v16 = vld [vmem:[#allocation6] sm:$0xff]  ;;  %p290_p13 = por %p289_p12, %p288_p11 }
  0x22   :  { %208 = vmatpush3.msra.mxu0 %v66_v2  ;;  %v50_v17 = vld [vmem:[#allocation3 + $0x8] sm:$0xff]  ;;  %v184_v18 = vld [vmem:[%s357_s2] ss:$0 sm:$0xff] }
  0x23   :  { %209 = vmatprep.subr.mxu0 %v65_v3  ;;  %p291_p0 = pnand %p290_p13, %p284_p10 }
  0x24   :  { %210 = vmatpush3.msra.mxu0 %v65_v3 }
  0x25   :  { %211 = vmatprep.subr.mxu0 %v64_v5 }
  0x26   :  { %212 = vmatpush3.msra.mxu0 %v64_v5 }
  0x27   :  { %213 = vmatprep.subr.mxu0 %v63_v6 }
  0x28   :  { %214 = vmatpush3.msra.mxu0 %v63_v6 }
  0x29   :  { %215 = vmatprep.subr.mxu0 %v62_v7 }
  0x2a   :  { %216 = vmatpush3.msra.mxu0 %v62_v7 }
  0x2b   :  { %217 = vmatprep.subr.mxu0 %v61_v8 }
  0x2c   :  { %218 = vmatpush3.msra.mxu0 %v61_v8 }
  0x2d   :  { %219 = vmatprep.subr.mxu0 %v60_v9 }
  0x2e   :  { %220 = vmatpush3.msra.mxu0 %v60_v9 }
  0x2f   :  { %221 = vmatprep.subr.mxu0 %v59_v10 }
  0x30   :  { %222 = vmatpush3.msra.mxu0 %v59_v10 }
  0x31   :  { %223 = vmatprep.subr.mxu0 %v58_v11 }
  0x32   :  { %224 = vmatpush3.msra.mxu0 %v58_v11 }
  0x33   :  { %225 = vmatprep.subr.mxu0 %v57_v12 }
  0x34   :  { %226 = vmatpush3.msra.mxu0 %v57_v12 }
  0x35   :  { %227 = vmatprep.subr.mxu0 %v56_v13 }
  0x36   :  { %228 = vmatpush3.msra.mxu0 %v56_v13 }
  0x37   :  { %229 = vmatprep.subr.mxu0 %v55_v14 }
  0x38   :  { %230 = vmatpush3.msra.mxu0 %v55_v14 }
  0x39   :  { %231 = vmatprep.subr.mxu0 %v54_v15 }
  0x3a   :  { %232 = vmatpush3.msra.mxu0 %v54_v15 }
  0x3b   :  { %233 = vmatprep.subr.mxu0 %v53_v16 }
  0x3c   :  { %234 = vmatpush3.msra.mxu0 %v53_v16 }
  0x3d   :  { %236 = vmatmul.mubr.f32.vlgmr.msra.gmra.mxu0 %v50_v17 }
  0xfd   :  { %v237_v19 = vpop.f32.mrf.mxu0 }
  0xfe   :  { %v161_v20 = vadd.f32 %v237_v19, %v184_v18 }
  0xff   :  { %v135_v21 = vpop.f32.mrf.mxu0 }
 0x100   :  { %v163_v22 = vmax.f32 %v161_v20, 0.0  ;;  %v160_v23 = vadd.f32 %v184_v18, %v135_v21 }
 0x102   :  { %165 = vst [vmem:[#allocation8 + $0x8] sm:$0xff] %v163_v22  ;;  %v162_v24 = vmax.f32 %v160_v23, 0.0 }
 0x104   :  { %164 = vst [vmem:[#allocation8] sm:$0xff] %v162_v24 }
 0x105   :  { %294 = shalt.err (!%p291_p0)
}
 0x106   :  { %177 = dma.vmem_to_hbm [thread:$0]  %s172_s25, 256, %s358_s3, [#allocation5], %s310_s15, %s310_s15, %s311_s16  }
 0x107   :  { %307 = dma.done.wait [#allocation5], 256  }
 0x108   :  { %308 = vsyncadd [#allocation5], 4294967040 }
 0x109   :  { %181 = vsyncpa [#allocation4], 1 }
 0x10a   :  { %182 = vsyncpa [#allocation7], 1 }
 0x10b   :  { %183 = vsyncpa [#allocation5], 1 }

</bundles_post_ra>
